<compile_context>
chip_gen: v5e
topology: v5e:2x2
jax: 0.10.0
libtpu: 0.0.40
codegen_flags: <defaults>
</compile_context>

<pallas_src>
import functools

import jax
import jax.numpy as jnp
from jax.experimental import pallas as pl
from jax.experimental.pallas import tpu as pltpu

LN_EPS = 1e-5

# Per-layer parameter stacks (same key names for the raw PyTorch-style params and the
# prepared kernel params; prepare_params only folds the attention scale and adds hmask).
PARAM_KEYS = ("wqkv", "bqkv", "wo", "bo", "g1", "b1ln",
              "w1", "b1", "w2", "b2", "g2", "b2ln")


def _layer_norm(x, gamma, beta):
    mu = jnp.mean(x, axis=-1, keepdims=True)
    var = jnp.mean(jnp.square(x - mu), axis=-1, keepdims=True)
    return (x - mu) * jax.lax.rsqrt(var + LN_EPS) * gamma + beta


def _roll_rows(x, shift):
    """jnp.roll(x, shift, axis=0) for a static, sublane-tile-aligned shift.

    Equivalent to pltpu.roll along the modality/row axis by a multiple of the sublane
    tile; written as two tile-aligned row slices + concat, which lowers to pure vreg
    moves (no relayout, no 4-D broadcast).
    """
    if shift == 0:
        return x
    return jnp.concatenate([x[-shift:, :], x[:-shift, :]], axis=0)


def _encoder_layer(x, hmask, wqkv, bqkv, wo, bo, g1, b1ln,
                   w1, b1, w2, b2, g2, b2ln, *, seq, block_n):
    """One post-norm TransformerEncoderLayer (eval mode, zero attention mask).

    x: (M, E) running activation, M = seq * block_n, rows modality-major
    (row r = s*block_n + n).  Everything stays 2-D; the key/modality axis is
    statically unrolled and aligned with sublane-tile rolls.
    """
    M, E = x.shape

    # Fused QKV projection (one MXU pass); 1/sqrt(dh) is already folded into the
    # Q third of wqkv/bqkv by prepare_params.  One bias add for all three.
    qkv = jnp.dot(x, wqkv, preferred_element_type=jnp.float32) + bqkv    # (M, 3E)
    q = qkv[:, :E]
    kv = qkv[:, E:]                                                      # (M, 2E), K|V fused

    # Unrolled key/modality axis.  Rolling by a multiple of block_n keeps each query
    # row paired with keys/values of its own batch element, and over d = 0..seq-1 each
    # row sees every modality exactly once (softmax is invariant to enumeration order).
    s_reps, vals = [], []
    for d in range(seq):
        kv_d = _roll_rows(kv, d * block_n)
        k_d, v_d = kv_d[:, :E], kv_d[:, E:]
        # Per-head score replicated across that head's dh lanes: a single matmul
        # against the block-diagonal head mask (B = G @ GT fused).
        s_reps.append(jnp.dot(q * k_d, hmask, preferred_element_type=jnp.float32))
        vals.append(v_d)

    # Softmax over the seq key offsets; per-lane, all operands stay (M, E).
    m = s_reps[0]
    for s_d in s_reps[1:]:
        m = jnp.maximum(m, s_d)
    ps = [jnp.exp(s_d - m) for s_d in s_reps]
    denom = ps[0]
    for p_d in ps[1:]:
        denom = denom + p_d
    ctx = ps[0] * vals[0]
    for p_d, v_d in zip(ps[1:], vals[1:]):
        ctx = ctx + p_d * v_d
    ctx = ctx * pl.reciprocal(denom, approx=True)                        # EUP, off the VALU

    # attn out-proj + residual + norm1, then FFN + residual + norm2 (post-norm).
    x = _layer_norm(x + jnp.dot(ctx, wo, preferred_element_type=jnp.float32) + bo,
                    g1, b1ln)
    h1 = jnp.maximum(jnp.dot(x, w1, preferred_element_type=jnp.float32) + b1, 0.0)
    x = _layer_norm(x + jnp.dot(h1, w2, preferred_element_type=jnp.float32) + b2,
                    g2, b2ln)
    return x


def fusion_kernel(x_ref, hmask_ref,
                  wqkv_ref, bqkv_ref, wo_ref, bo_ref, g1_ref, b1ln_ref,
                  w1_ref, b1_ref, w2_ref, b2_ref, g2_ref, b2ln_ref,
                  out_ref, *, nlayers):
    S, NB, E = x_ref.shape
    M = S * NB
    hmask = hmask_ref[...]                                               # (E, E) block-diag

    # relu() of each intra-modal embedding (torch: x.relu() before cat), then flatten
    # to (M, E).  NB is a multiple of 8, so merging the leading dims is layout-free.
    x = jnp.maximum(x_ref[...], 0.0).reshape(M, E)

    stacks = (wqkv_ref, bqkv_ref, wo_ref, bo_ref, g1_ref, b1ln_ref,
              w1_ref, b1_ref, w2_ref, b2_ref, g2_ref, b2ln_ref)
    for l in range(nlayers):                                             # static unroll
        x = _encoder_layer(x, hmask, *(r[l] for r in stacks), seq=S, block_n=NB)

    # Lane-dense output block (NB, S*E): row n = concat of that batch element's
    # modalities == permute(1, 0, 2) + reshape of the seq-first reference result.
    out_ref[...] = jnp.concatenate(
        [x[s * NB:(s + 1) * NB, :] for s in range(S)], axis=-1)


def inter_modal_fusion(modality_list, params, *, block_n=8):
    """modality_list: list of (N, ninp) arrays -> (N, num_modalities * ninp)."""
    x = jnp.stack(modality_list, axis=0).astype(jnp.float32)             # (S, N, E) seq-first
    S, N, E = x.shape
    nlayers = params["wqkv"].shape[0]
    if N % block_n:
        raise ValueError(f"batch size {N} must be a multiple of block_n={block_n}")

    def resident(key):                                                   # stays in VMEM
        shp = params[key].shape
        return pl.BlockSpec(shp, lambda b, _nd=len(shp): (0,) * _nd)

    out = pl.pallas_call(
        functools.partial(fusion_kernel, nlayers=nlayers),
        out_shape=jax.ShapeDtypeStruct((N, S * E), jnp.float32),
        grid=(N // block_n,),
        in_specs=[pl.BlockSpec((S, block_n, E), lambda b: (0, b, 0)),
                  pl.BlockSpec(params["hmask"].shape, lambda b: (0, 0))]
                 + [resident(k) for k in PARAM_KEYS],
        out_specs=pl.BlockSpec((block_n, S * E), lambda b: (b, 0)),
        compiler_params=pltpu.CompilerParams(
            dimension_semantics=("parallel",)),                          # megacore on v7x
    )(x, params["hmask"], *[params[k] for k in PARAM_KEYS])
    return out


def prepare_params(raw, *, nhead):
    """One-time host transform of PyTorch-style params into the kernel layout.

    * folds the 1/sqrt(dh) attention scale into the Q third of the fused QKV
      projection weights and bias (no per-call scaling, no in-kernel QKV split weights)
    * builds the (E, E) block-diagonal head mask B = G @ GT used in-kernel to reduce
      lane-wise q*k products to per-head scores replicated over each head's dh lanes.
    Everything stays f32 (bf16 buys nothing at these tiny matmul shapes).
    """
    E = raw["wqkv"].shape[1]
    dh = E // nhead
    scale = float(dh) ** -0.5

    col = jnp.arange(3 * E)
    qscale = jnp.where(col < E, scale, 1.0).astype(jnp.float32)
    lane = jnp.arange(E)
    hmask = (lane[:, None] // dh == lane[None, :] // dh).astype(jnp.float32)

    out = dict(raw)
    out["wqkv"] = raw["wqkv"] * qscale
    out["bqkv"] = raw["bqkv"] * qscale
    out["hmask"] = hmask
    return out


# ----------------------------- pure-JAX reference -----------------------------

def _ref_encoder_layer(x, wqkv, bqkv, wo, bo, g1, b1ln, w1, b1, w2, b2, g2, b2ln,
                       *, nhead):
    """Pure-JAX reference of one PyTorch TransformerEncoderLayer (eval mode)."""
    N, S, E = x.shape
    dh = E // nhead
    qkv = jnp.einsum("nse,ef->nsf", x, wqkv) + bqkv
    q, k, v = jnp.split(qkv, 3, axis=-1)

    def split_heads(t):                                                  # (N,S,E)->(N,H,S,dh)
        return t.reshape(N, S, nhead, dh).transpose(0, 2, 1, 3)

    qh = split_heads(q) * (float(dh) ** -0.5)
    kh, vh = split_heads(k), split_heads(v)
    s = jnp.einsum("nhqd,nhkd->nhqk", qh, kh)
    p = jax.nn.softmax(s, axis=-1)
    ctx = jnp.einsum("nhqk,nhkd->nhqd", p, vh)
    ctx = ctx.transpose(0, 2, 1, 3).reshape(N, S, E)

    x = _layer_norm(x + jnp.einsum("nse,ef->nsf", ctx, wo) + bo, g1, b1ln)
    h1 = jax.nn.relu(jnp.einsum("nse,ef->nsf", x, w1) + b1)
    x = _layer_norm(x + jnp.einsum("nsf,fe->nse", h1, w2) + b2, g2, b2ln)
    return x


def ref_forward(modality_list, raw_params, *, nhead):
    """Pure-JAX reference of the full forward pass (batch-first layout)."""
    x = jax.nn.relu(jnp.stack(modality_list, axis=1).astype(jnp.float32))
    for l in range(raw_params["wqkv"].shape[0]):
        x = _ref_encoder_layer(x, *[raw_params[k][l] for k in PARAM_KEYS], nhead=nhead)
    N, S, E = x.shape
    return x.reshape(N, S * E)


def init_params(key, *, nlayers, ninp, nhid):
    """Deterministic synthetic init (shapes from TransformerEncoderLayer)."""
    E, F = ninp, nhid
    ks = jax.random.split(key, 6)

    def u(k, shape, scale=0.1):
        return jax.random.uniform(k, shape, jnp.float32, -scale, scale)

    return {
        "wqkv": u(ks[0], (nlayers, E, 3 * E)),        # in_proj_weight^T
        "bqkv": u(ks[1], (nlayers, 1, 3 * E), 0.02),  # in_proj_bias
        "wo":   u(ks[2], (nlayers, E, E)),            # out_proj.weight^T
        "bo":   u(ks[3], (nlayers, 1, E), 0.02),
        "g1":   jnp.ones((nlayers, 1, E), jnp.float32),
        "b1ln": jnp.zeros((nlayers, 1, E), jnp.float32),
        "w1":   u(ks[4], (nlayers, E, F)),            # linear1.weight^T
        "b1":   jnp.zeros((nlayers, 1, F), jnp.float32),
        "w2":   u(ks[5], (nlayers, F, E)),            # linear2.weight^T
        "b2":   jnp.zeros((nlayers, 1, E), jnp.float32),
        "g2":   jnp.ones((nlayers, 1, E), jnp.float32),
        "b2ln": jnp.zeros((nlayers, 1, E), jnp.float32),
    }


if __name__ == "__main__":
    N, NINP, NHEAD, NHID, NLAYERS, NMOD = 8, 32, 4, 64, 2, 3

    key = jax.random.PRNGKey(0)
    kp, *kmods = jax.random.split(key, 1 + NMOD)
    modalities = [jax.random.normal(k, (N, NINP), jnp.float32) for k in kmods]

    raw_params = init_params(kp, nlayers=NLAYERS, ninp=NINP, nhid=NHID)
    params = prepare_params(raw_params, nhead=NHEAD)   # fold scale, build head mask

    out = jax.block_until_ready(inter_modal_fusion(modalities, params, block_n=8))

    ref = ref_forward(modalities, raw_params, nhead=NHEAD)
    assert out.shape == (N, NMOD * NINP), out.shape
    max_err = float(jnp.max(jnp.abs(out - ref)))
    # approx-reciprocal softmax normalization (EUP) -> ~1e-3 abs error on O(1) outputs
    assert max_err < 5e-3, max_err
    print("KERNEL_OK")
</pallas_src>

<mosaic_0001>
module attributes {stable_mosaic.version = 11 : i64} {
  func.func @fusion_kernel(%arg0: i32, %arg1: memref<3x8x32xf32, #tpu.memory_space<vmem>>, %arg2: memref<32x32xf32, #tpu.memory_space<vmem>>, %arg3: memref<2x32x96xf32, #tpu.memory_space<vmem>>, %arg4: memref<2x1x96xf32, #tpu.memory_space<vmem>>, %arg5: memref<2x32x32xf32, #tpu.memory_space<vmem>>, %arg6: memref<2x1x32xf32, #tpu.memory_space<vmem>>, %arg7: memref<2x1x32xf32, #tpu.memory_space<vmem>>, %arg8: memref<2x1x32xf32, #tpu.memory_space<vmem>>, %arg9: memref<2x32x64xf32, #tpu.memory_space<vmem>>, %arg10: memref<2x1x64xf32, #tpu.memory_space<vmem>>, %arg11: memref<2x64x32xf32, #tpu.memory_space<vmem>>, %arg12: memref<2x1x32xf32, #tpu.memory_space<vmem>>, %arg13: memref<2x1x32xf32, #tpu.memory_space<vmem>>, %arg14: memref<2x1x32xf32, #tpu.memory_space<vmem>>, %arg15: memref<8x96xf32, #tpu.memory_space<vmem>>) attributes {dimension_semantics = [#tpu.dimension_semantics<parallel>], iteration_bounds = array<i64: 1>, scalar_prefetch = 0 : i64, scratch_operands = 0 : i64, tpu.core_type = #tpu.core_type<tc>, window_params = [{transform_indices = @transform_0, window_bounds = array<i64: 3, 8, 32>}, {pipeline_mode = #tpu.pipeline_mode<synchronous>, transform_indices = @transform_1, window_bounds = array<i64: 32, 32>}, {pipeline_mode = #tpu.pipeline_mode<synchronous>, transform_indices = @transform_2, window_bounds = array<i64: 2, 32, 96>}, {pipeline_mode = #tpu.pipeline_mode<synchronous>, transform_indices = @transform_3, window_bounds = array<i64: 2, 1, 96>}, {pipeline_mode = #tpu.pipeline_mode<synchronous>, transform_indices = @transform_4, window_bounds = array<i64: 2, 32, 32>}, {pipeline_mode = #tpu.pipeline_mode<synchronous>, transform_indices = @transform_5, window_bounds = array<i64: 2, 1, 32>}, {pipeline_mode = #tpu.pipeline_mode<synchronous>, transform_indices = @transform_6, window_bounds = array<i64: 2, 1, 32>}, {pipeline_mode = #tpu.pipeline_mode<synchronous>, transform_indices = @transform_7, window_bounds = array<i64: 2, 1, 32>}, {pipeline_mode = #tpu.pipeline_mode<synchronous>, transform_indices = @transform_8, window_bounds = array<i64: 2, 32, 64>}, {pipeline_mode = #tpu.pipeline_mode<synchronous>, transform_indices = @transform_9, window_bounds = array<i64: 2, 1, 64>}, {pipeline_mode = #tpu.pipeline_mode<synchronous>, transform_indices = @transform_10, window_bounds = array<i64: 2, 64, 32>}, {pipeline_mode = #tpu.pipeline_mode<synchronous>, transform_indices = @transform_11, window_bounds = array<i64: 2, 1, 32>}, {pipeline_mode = #tpu.pipeline_mode<synchronous>, transform_indices = @transform_12, window_bounds = array<i64: 2, 1, 32>}, {pipeline_mode = #tpu.pipeline_mode<synchronous>, transform_indices = @transform_13, window_bounds = array<i64: 2, 1, 32>}, {transform_indices = @transform_14, window_bounds = array<i64: 8, 96>}]} {
    %c0 = arith.constant 0 : index
    %c0_0 = arith.constant 0 : index
    %0 = vector.load %arg2[%c0, %c0_0] : memref<32x32xf32, #tpu.memory_space<vmem>>, vector<32x32xf32>
    %c0_1 = arith.constant 0 : index
    %c0_2 = arith.constant 0 : index
    %c0_3 = arith.constant 0 : index
    %1 = vector.load %arg1[%c0_1, %c0_2, %c0_3] : memref<3x8x32xf32, #tpu.memory_space<vmem>>, vector<3x8x32xf32>
    %cst = arith.constant 0.000000e+00 : f32
    %2 = vector.broadcast %cst : f32 to vector<3x8x32xf32>
    %3 = arith.maximumf %1, %2 : vector<3x8x32xf32>
    %4 = vector.shape_cast %3 : vector<3x8x32xf32> to vector<24x32xf32>
    %c0_4 = arith.constant 0 : index
    %c0_5 = arith.constant 0 : index
    %c0_6 = arith.constant 0 : index
    %5 = vector.load %arg3[%c0_4, %c0_5, %c0_6] : memref<2x32x96xf32, #tpu.memory_space<vmem>>, vector<1x32x96xf32>
    %6 = vector.shape_cast %5 : vector<1x32x96xf32> to vector<32x96xf32>
    %c0_7 = arith.constant 0 : index
    %c0_8 = arith.constant 0 : index
    %c0_9 = arith.constant 0 : index
    %7 = vector.load %arg4[%c0_7, %c0_8, %c0_9] : memref<2x1x96xf32, #tpu.memory_space<vmem>>, vector<1x1x96xf32>
    %8 = vector.shape_cast %7 : vector<1x1x96xf32> to vector<1x96xf32>
    %c0_10 = arith.constant 0 : index
    %c0_11 = arith.constant 0 : index
    %c0_12 = arith.constant 0 : index
    %9 = vector.load %arg5[%c0_10, %c0_11, %c0_12] : memref<2x32x32xf32, #tpu.memory_space<vmem>>, vector<1x32x32xf32>
    %10 = vector.shape_cast %9 : vector<1x32x32xf32> to vector<32x32xf32>
    %c0_13 = arith.constant 0 : index
    %c0_14 = arith.constant 0 : index
    %c0_15 = arith.constant 0 : index
    %11 = vector.load %arg6[%c0_13, %c0_14, %c0_15] : memref<2x1x32xf32, #tpu.memory_space<vmem>>, vector<1x1x32xf32>
    %12 = vector.shape_cast %11 : vector<1x1x32xf32> to vector<1x32xf32>
    %c0_16 = arith.constant 0 : index
    %c0_17 = arith.constant 0 : index
    %c0_18 = arith.constant 0 : index
    %13 = vector.load %arg7[%c0_16, %c0_17, %c0_18] : memref<2x1x32xf32, #tpu.memory_space<vmem>>, vector<1x1x32xf32>
    %14 = vector.shape_cast %13 : vector<1x1x32xf32> to vector<1x32xf32>
    %c0_19 = arith.constant 0 : index
    %c0_20 = arith.constant 0 : index
    %c0_21 = arith.constant 0 : index
    %15 = vector.load %arg8[%c0_19, %c0_20, %c0_21] : memref<2x1x32xf32, #tpu.memory_space<vmem>>, vector<1x1x32xf32>
    %16 = vector.shape_cast %15 : vector<1x1x32xf32> to vector<1x32xf32>
    %c0_22 = arith.constant 0 : index
    %c0_23 = arith.constant 0 : index
    %c0_24 = arith.constant 0 : index
    %17 = vector.load %arg9[%c0_22, %c0_23, %c0_24] : memref<2x32x64xf32, #tpu.memory_space<vmem>>, vector<1x32x64xf32>
    %18 = vector.shape_cast %17 : vector<1x32x64xf32> to vector<32x64xf32>
    %c0_25 = arith.constant 0 : index
    %c0_26 = arith.constant 0 : index
    %c0_27 = arith.constant 0 : index
    %19 = vector.load %arg10[%c0_25, %c0_26, %c0_27] : memref<2x1x64xf32, #tpu.memory_space<vmem>>, vector<1x1x64xf32>
    %20 = vector.shape_cast %19 : vector<1x1x64xf32> to vector<1x64xf32>
    %c0_28 = arith.constant 0 : index
    %c0_29 = arith.constant 0 : index
    %c0_30 = arith.constant 0 : index
    %21 = vector.load %arg11[%c0_28, %c0_29, %c0_30] : memref<2x64x32xf32, #tpu.memory_space<vmem>>, vector<1x64x32xf32>
    %22 = vector.shape_cast %21 : vector<1x64x32xf32> to vector<64x32xf32>
    %c0_31 = arith.constant 0 : index
    %c0_32 = arith.constant 0 : index
    %c0_33 = arith.constant 0 : index
    %23 = vector.load %arg12[%c0_31, %c0_32, %c0_33] : memref<2x1x32xf32, #tpu.memory_space<vmem>>, vector<1x1x32xf32>
    %24 = vector.shape_cast %23 : vector<1x1x32xf32> to vector<1x32xf32>
    %c0_34 = arith.constant 0 : index
    %c0_35 = arith.constant 0 : index
    %c0_36 = arith.constant 0 : index
    %25 = vector.load %arg13[%c0_34, %c0_35, %c0_36] : memref<2x1x32xf32, #tpu.memory_space<vmem>>, vector<1x1x32xf32>
    %26 = vector.shape_cast %25 : vector<1x1x32xf32> to vector<1x32xf32>
    %c0_37 = arith.constant 0 : index
    %c0_38 = arith.constant 0 : index
    %c0_39 = arith.constant 0 : index
    %27 = vector.load %arg14[%c0_37, %c0_38, %c0_39] : memref<2x1x32xf32, #tpu.memory_space<vmem>>, vector<1x1x32xf32>
    %28 = vector.shape_cast %27 : vector<1x1x32xf32> to vector<1x32xf32>
    %cst_40 = arith.constant dense<0.000000e+00> : vector<24x96xf32>
    %29 = tpu.matmul %4, %6, %cst_40 {dimension_numbers = #tpu.dot_dimension_numbers<[1], [0], [0], [1], [0, 0, 1, 1], [], []>} : vector<24x32xf32>, vector<32x96xf32>, vector<24x96xf32> -> vector<24x96xf32>
    %30 = vector.broadcast %8 : vector<1x96xf32> to vector<24x96xf32>
    %31 = arith.addf %29, %30 : vector<24x96xf32>
    %32 = vector.extract_strided_slice %31 {offsets = [0, 0], sizes = [24, 32], strides = [1, 1]} : vector<24x96xf32> to vector<24x32xf32>
    %33 = vector.extract_strided_slice %31 {offsets = [0, 32], sizes = [24, 64], strides = [1, 1]} : vector<24x96xf32> to vector<24x64xf32>
    %34 = vector.extract_strided_slice %33 {offsets = [0, 0], sizes = [24, 32], strides = [1, 1]} : vector<24x64xf32> to vector<24x32xf32>
    %35 = vector.extract_strided_slice %33 {offsets = [0, 32], sizes = [24, 32], strides = [1, 1]} : vector<24x64xf32> to vector<24x32xf32>
    %36 = arith.mulf %32, %34 : vector<24x32xf32>
    %cst_41 = arith.constant dense<0.000000e+00> : vector<24x32xf32>
    %37 = tpu.matmul %36, %0, %cst_41 {dimension_numbers = #tpu.dot_dimension_numbers<[1], [0], [0], [1], [0, 0, 1, 1], [], []>} : vector<24x32xf32>, vector<32x32xf32>, vector<24x32xf32> -> vector<24x32xf32>
    %38 = vector.extract_strided_slice %33 {offsets = [16, 0], sizes = [8, 64], strides = [1, 1]} : vector<24x64xf32> to vector<8x64xf32>
    %39 = vector.extract_strided_slice %33 {offsets = [0, 0], sizes = [16, 64], strides = [1, 1]} : vector<24x64xf32> to vector<16x64xf32>
    %40 = tpu.concatenate %38, %39 in 0 : vector<8x64xf32>, vector<16x64xf32> -> vector<24x64xf32>
    %41 = vector.extract_strided_slice %40 {offsets = [0, 0], sizes = [24, 32], strides = [1, 1]} : vector<24x64xf32> to vector<24x32xf32>
    %42 = vector.extract_strided_slice %40 {offsets = [0, 32], sizes = [24, 32], strides = [1, 1]} : vector<24x64xf32> to vector<24x32xf32>
    %43 = arith.mulf %32, %41 : vector<24x32xf32>
    %cst_42 = arith.constant dense<0.000000e+00> : vector<24x32xf32>
    %44 = tpu.matmul %43, %0, %cst_42 {dimension_numbers = #tpu.dot_dimension_numbers<[1], [0], [0], [1], [0, 0, 1, 1], [], []>} : vector<24x32xf32>, vector<32x32xf32>, vector<24x32xf32> -> vector<24x32xf32>
    %45 = vector.extract_strided_slice %33 {offsets = [8, 0], sizes = [16, 64], strides = [1, 1]} : vector<24x64xf32> to vector<16x64xf32>
    %46 = vector.extract_strided_slice %33 {offsets = [0, 0], sizes = [8, 64], strides = [1, 1]} : vector<24x64xf32> to vector<8x64xf32>
    %47 = tpu.concatenate %45, %46 in 0 : vector<16x64xf32>, vector<8x64xf32> -> vector<24x64xf32>
    %48 = vector.extract_strided_slice %47 {offsets = [0, 0], sizes = [24, 32], strides = [1, 1]} : vector<24x64xf32> to vector<24x32xf32>
    %49 = vector.extract_strided_slice %47 {offsets = [0, 32], sizes = [24, 32], strides = [1, 1]} : vector<24x64xf32> to vector<24x32xf32>
    %50 = arith.mulf %32, %48 : vector<24x32xf32>
    %cst_43 = arith.constant dense<0.000000e+00> : vector<24x32xf32>
    %51 = tpu.matmul %50, %0, %cst_43 {dimension_numbers = #tpu.dot_dimension_numbers<[1], [0], [0], [1], [0, 0, 1, 1], [], []>} : vector<24x32xf32>, vector<32x32xf32>, vector<24x32xf32> -> vector<24x32xf32>
    %52 = arith.maximumf %37, %44 : vector<24x32xf32>
    %53 = arith.maximumf %52, %51 : vector<24x32xf32>
    %54 = arith.subf %37, %53 : vector<24x32xf32>
    %55 = math.exp %54 : vector<24x32xf32>
    %56 = arith.subf %44, %53 : vector<24x32xf32>
    %57 = math.exp %56 : vector<24x32xf32>
    %58 = arith.subf %51, %53 : vector<24x32xf32>
    %59 = math.exp %58 : vector<24x32xf32>
    %60 = arith.addf %55, %57 : vector<24x32xf32>
    %61 = arith.addf %60, %59 : vector<24x32xf32>
    %62 = arith.mulf %55, %35 : vector<24x32xf32>
    %63 = arith.mulf %57, %42 : vector<24x32xf32>
    %64 = arith.addf %62, %63 : vector<24x32xf32>
    %65 = arith.mulf %59, %49 : vector<24x32xf32>
    %66 = arith.addf %64, %65 : vector<24x32xf32>
    %67 = tpu.reciprocal %61 {approx = true} : vector<24x32xf32> -> vector<24x32xf32>
    %68 = arith.mulf %66, %67 : vector<24x32xf32>
    %cst_44 = arith.constant dense<0.000000e+00> : vector<24x32xf32>
    %69 = tpu.matmul %68, %10, %cst_44 {dimension_numbers = #tpu.dot_dimension_numbers<[1], [0], [0], [1], [0, 0, 1, 1], [], []>} : vector<24x32xf32>, vector<32x32xf32>, vector<24x32xf32> -> vector<24x32xf32>
    %70 = arith.addf %4, %69 : vector<24x32xf32>
    %71 = vector.broadcast %12 : vector<1x32xf32> to vector<24x32xf32>
    %72 = arith.addf %70, %71 : vector<24x32xf32>
    %cst_45 = arith.constant dense<0.000000e+00> : vector<24xf32>
    %73 = vector.multi_reduction <add>, %72, %cst_45 [1] : vector<24x32xf32> to vector<24xf32>
    %74 = vector.shape_cast %73 : vector<24xf32> to vector<24x1xf32>
    %cst_46 = arith.constant 3.200000e+01 : f32
    %75 = vector.broadcast %cst_46 : f32 to vector<24x1xf32>
    %76 = arith.divf %74, %75 : vector<24x1xf32>
    %77 = vector.broadcast %76 : vector<24x1xf32> to vector<24x32xf32>
    %78 = arith.subf %72, %77 : vector<24x32xf32>
    %79 = arith.mulf %78, %78 : vector<24x32xf32>
    %cst_47 = arith.constant dense<0.000000e+00> : vector<24xf32>
    %80 = vector.multi_reduction <add>, %79, %cst_47 [1] : vector<24x32xf32> to vector<24xf32>
    %81 = vector.shape_cast %80 : vector<24xf32> to vector<24x1xf32>
    %cst_48 = arith.constant 3.200000e+01 : f32
    %82 = vector.broadcast %cst_48 : f32 to vector<24x1xf32>
    %83 = arith.divf %81, %82 : vector<24x1xf32>
    %84 = vector.broadcast %76 : vector<24x1xf32> to vector<24x32xf32>
    %85 = arith.subf %72, %84 : vector<24x32xf32>
    %cst_49 = arith.constant 9.99999974E-6 : f32
    %86 = vector.broadcast %cst_49 : f32 to vector<24x1xf32>
    %87 = arith.addf %83, %86 : vector<24x1xf32>
    %88 = math.rsqrt %87 : vector<24x1xf32>
    %89 = vector.broadcast %88 : vector<24x1xf32> to vector<24x32xf32>
    %90 = arith.mulf %85, %89 : vector<24x32xf32>
    %91 = vector.broadcast %14 : vector<1x32xf32> to vector<24x32xf32>
    %92 = arith.mulf %90, %91 : vector<24x32xf32>
    %93 = vector.broadcast %16 : vector<1x32xf32> to vector<24x32xf32>
    %94 = arith.addf %92, %93 : vector<24x32xf32>
    %cst_50 = arith.constant dense<0.000000e+00> : vector<24x64xf32>
    %95 = tpu.matmul %94, %18, %cst_50 {dimension_numbers = #tpu.dot_dimension_numbers<[1], [0], [0], [1], [0, 0, 1, 1], [], []>} : vector<24x32xf32>, vector<32x64xf32>, vector<24x64xf32> -> vector<24x64xf32>
    %96 = vector.broadcast %20 : vector<1x64xf32> to vector<24x64xf32>
    %97 = arith.addf %95, %96 : vector<24x64xf32>
    %cst_51 = arith.constant 0.000000e+00 : f32
    %98 = vector.broadcast %cst_51 : f32 to vector<24x64xf32>
    %99 = arith.maximumf %97, %98 : vector<24x64xf32>
    %cst_52 = arith.constant dense<0.000000e+00> : vector<24x32xf32>
    %100 = tpu.matmul %99, %22, %cst_52 {dimension_numbers = #tpu.dot_dimension_numbers<[1], [0], [0], [1], [0, 0, 1, 1], [], []>} : vector<24x64xf32>, vector<64x32xf32>, vector<24x32xf32> -> vector<24x32xf32>
    %101 = arith.addf %94, %100 : vector<24x32xf32>
    %102 = vector.broadcast %24 : vector<1x32xf32> to vector<24x32xf32>
    %103 = arith.addf %101, %102 : vector<24x32xf32>
    %cst_53 = arith.constant dense<0.000000e+00> : vector<24xf32>
    %104 = vector.multi_reduction <add>, %103, %cst_53 [1] : vector<24x32xf32> to vector<24xf32>
    %105 = vector.shape_cast %104 : vector<24xf32> to vector<24x1xf32>
    %cst_54 = arith.constant 3.200000e+01 : f32
    %106 = vector.broadcast %cst_54 : f32 to vector<24x1xf32>
    %107 = arith.divf %105, %106 : vector<24x1xf32>
    %108 = vector.broadcast %107 : vector<24x1xf32> to vector<24x32xf32>
    %109 = arith.subf %103, %108 : vector<24x32xf32>
    %110 = arith.mulf %109, %109 : vector<24x32xf32>
    %cst_55 = arith.constant dense<0.000000e+00> : vector<24xf32>
    %111 = vector.multi_reduction <add>, %110, %cst_55 [1] : vector<24x32xf32> to vector<24xf32>
    %112 = vector.shape_cast %111 : vector<24xf32> to vector<24x1xf32>
    %cst_56 = arith.constant 3.200000e+01 : f32
    %113 = vector.broadcast %cst_56 : f32 to vector<24x1xf32>
    %114 = arith.divf %112, %113 : vector<24x1xf32>
    %115 = vector.broadcast %107 : vector<24x1xf32> to vector<24x32xf32>
    %116 = arith.subf %103, %115 : vector<24x32xf32>
    %cst_57 = arith.constant 9.99999974E-6 : f32
    %117 = vector.broadcast %cst_57 : f32 to vector<24x1xf32>
    %118 = arith.addf %114, %117 : vector<24x1xf32>
    %119 = math.rsqrt %118 : vector<24x1xf32>
    %120 = vector.broadcast %119 : vector<24x1xf32> to vector<24x32xf32>
    %121 = arith.mulf %116, %120 : vector<24x32xf32>
    %122 = vector.broadcast %26 : vector<1x32xf32> to vector<24x32xf32>
    %123 = arith.mulf %121, %122 : vector<24x32xf32>
    %124 = vector.broadcast %28 : vector<1x32xf32> to vector<24x32xf32>
    %125 = arith.addf %123, %124 : vector<24x32xf32>
    %c1 = arith.constant 1 : index
    %c0_58 = arith.constant 0 : index
    %c0_59 = arith.constant 0 : index
    %126 = vector.load %arg3[%c1, %c0_58, %c0_59] : memref<2x32x96xf32, #tpu.memory_space<vmem>>, vector<1x32x96xf32>
    %127 = vector.shape_cast %126 : vector<1x32x96xf32> to vector<32x96xf32>
    %c1_60 = arith.constant 1 : index
    %c0_61 = arith.constant 0 : index
    %c0_62 = arith.constant 0 : index
    %128 = vector.load %arg4[%c1_60, %c0_61, %c0_62] : memref<2x1x96xf32, #tpu.memory_space<vmem>>, vector<1x1x96xf32>
    %129 = vector.shape_cast %128 : vector<1x1x96xf32> to vector<1x96xf32>
    %c1_63 = arith.constant 1 : index
    %c0_64 = arith.constant 0 : index
    %c0_65 = arith.constant 0 : index
    %130 = vector.load %arg5[%c1_63, %c0_64, %c0_65] : memref<2x32x32xf32, #tpu.memory_space<vmem>>, vector<1x32x32xf32>
    %131 = vector.shape_cast %130 : vector<1x32x32xf32> to vector<32x32xf32>
    %c1_66 = arith.constant 1 : index
    %c0_67 = arith.constant 0 : index
    %c0_68 = arith.constant 0 : index
    %132 = vector.load %arg6[%c1_66, %c0_67, %c0_68] : memref<2x1x32xf32, #tpu.memory_space<vmem>>, vector<1x1x32xf32>
    %133 = vector.shape_cast %132 : vector<1x1x32xf32> to vector<1x32xf32>
    %c1_69 = arith.constant 1 : index
    %c0_70 = arith.constant 0 : index
    %c0_71 = arith.constant 0 : index
    %134 = vector.load %arg7[%c1_69, %c0_70, %c0_71] : memref<2x1x32xf32, #tpu.memory_space<vmem>>, vector<1x1x32xf32>
    %135 = vector.shape_cast %134 : vector<1x1x32xf32> to vector<1x32xf32>
    %c1_72 = arith.constant 1 : index
    %c0_73 = arith.constant 0 : index
    %c0_74 = arith.constant 0 : index
    %136 = vector.load %arg8[%c1_72, %c0_73, %c0_74] : memref<2x1x32xf32, #tpu.memory_space<vmem>>, vector<1x1x32xf32>
    %137 = vector.shape_cast %136 : vector<1x1x32xf32> to vector<1x32xf32>
    %c1_75 = arith.constant 1 : index
    %c0_76 = arith.constant 0 : index
    %c0_77 = arith.constant 0 : index
    %138 = vector.load %arg9[%c1_75, %c0_76, %c0_77] : memref<2x32x64xf32, #tpu.memory_space<vmem>>, vector<1x32x64xf32>
    %139 = vector.shape_cast %138 : vector<1x32x64xf32> to vector<32x64xf32>
    %c1_78 = arith.constant 1 : index
    %c0_79 = arith.constant 0 : index
    %c0_80 = arith.constant 0 : index
    %140 = vector.load %arg10[%c1_78, %c0_79, %c0_80] : memref<2x1x64xf32, #tpu.memory_space<vmem>>, vector<1x1x64xf32>
    %141 = vector.shape_cast %140 : vector<1x1x64xf32> to vector<1x64xf32>
    %c1_81 = arith.constant 1 : index
    %c0_82 = arith.constant 0 : index
    %c0_83 = arith.constant 0 : index
    %142 = vector.load %arg11[%c1_81, %c0_82, %c0_83] : memref<2x64x32xf32, #tpu.memory_space<vmem>>, vector<1x64x32xf32>
    %143 = vector.shape_cast %142 : vector<1x64x32xf32> to vector<64x32xf32>
    %c1_84 = arith.constant 1 : index
    %c0_85 = arith.constant 0 : index
    %c0_86 = arith.constant 0 : index
    %144 = vector.load %arg12[%c1_84, %c0_85, %c0_86] : memref<2x1x32xf32, #tpu.memory_space<vmem>>, vector<1x1x32xf32>
    %145 = vector.shape_cast %144 : vector<1x1x32xf32> to vector<1x32xf32>
    %c1_87 = arith.constant 1 : index
    %c0_88 = arith.constant 0 : index
    %c0_89 = arith.constant 0 : index
    %146 = vector.load %arg13[%c1_87, %c0_88, %c0_89] : memref<2x1x32xf32, #tpu.memory_space<vmem>>, vector<1x1x32xf32>
    %147 = vector.shape_cast %146 : vector<1x1x32xf32> to vector<1x32xf32>
    %c1_90 = arith.constant 1 : index
    %c0_91 = arith.constant 0 : index
    %c0_92 = arith.constant 0 : index
    %148 = vector.load %arg14[%c1_90, %c0_91, %c0_92] : memref<2x1x32xf32, #tpu.memory_space<vmem>>, vector<1x1x32xf32>
    %149 = vector.shape_cast %148 : vector<1x1x32xf32> to vector<1x32xf32>
    %cst_93 = arith.constant dense<0.000000e+00> : vector<24x96xf32>
    %150 = tpu.matmul %125, %127, %cst_93 {dimension_numbers = #tpu.dot_dimension_numbers<[1], [0], [0], [1], [0, 0, 1, 1], [], []>} : vector<24x32xf32>, vector<32x96xf32>, vector<24x96xf32> -> vector<24x96xf32>
    %151 = vector.broadcast %129 : vector<1x96xf32> to vector<24x96xf32>
    %152 = arith.addf %150, %151 : vector<24x96xf32>
    %153 = vector.extract_strided_slice %152 {offsets = [0, 0], sizes = [24, 32], strides = [1, 1]} : vector<24x96xf32> to vector<24x32xf32>
    %154 = vector.extract_strided_slice %152 {offsets = [0, 32], sizes = [24, 64], strides = [1, 1]} : vector<24x96xf32> to vector<24x64xf32>
    %155 = vector.extract_strided_slice %154 {offsets = [0, 0], sizes = [24, 32], strides = [1, 1]} : vector<24x64xf32> to vector<24x32xf32>
    %156 = vector.extract_strided_slice %154 {offsets = [0, 32], sizes = [24, 32], strides = [1, 1]} : vector<24x64xf32> to vector<24x32xf32>
    %157 = arith.mulf %153, %155 : vector<24x32xf32>
    %cst_94 = arith.constant dense<0.000000e+00> : vector<24x32xf32>
    %158 = tpu.matmul %157, %0, %cst_94 {dimension_numbers = #tpu.dot_dimension_numbers<[1], [0], [0], [1], [0, 0, 1, 1], [], []>} : vector<24x32xf32>, vector<32x32xf32>, vector<24x32xf32> -> vector<24x32xf32>
    %159 = vector.extract_strided_slice %154 {offsets = [16, 0], sizes = [8, 64], strides = [1, 1]} : vector<24x64xf32> to vector<8x64xf32>
    %160 = vector.extract_strided_slice %154 {offsets = [0, 0], sizes = [16, 64], strides = [1, 1]} : vector<24x64xf32> to vector<16x64xf32>
    %161 = tpu.concatenate %159, %160 in 0 : vector<8x64xf32>, vector<16x64xf32> -> vector<24x64xf32>
    %162 = vector.extract_strided_slice %161 {offsets = [0, 0], sizes = [24, 32], strides = [1, 1]} : vector<24x64xf32> to vector<24x32xf32>
    %163 = vector.extract_strided_slice %161 {offsets = [0, 32], sizes = [24, 32], strides = [1, 1]} : vector<24x64xf32> to vector<24x32xf32>
    %164 = arith.mulf %153, %162 : vector<24x32xf32>
    %cst_95 = arith.constant dense<0.000000e+00> : vector<24x32xf32>
    %165 = tpu.matmul %164, %0, %cst_95 {dimension_numbers = #tpu.dot_dimension_numbers<[1], [0], [0], [1], [0, 0, 1, 1], [], []>} : vector<24x32xf32>, vector<32x32xf32>, vector<24x32xf32> -> vector<24x32xf32>
    %166 = vector.extract_strided_slice %154 {offsets = [8, 0], sizes = [16, 64], strides = [1, 1]} : vector<24x64xf32> to vector<16x64xf32>
    %167 = vector.extract_strided_slice %154 {offsets = [0, 0], sizes = [8, 64], strides = [1, 1]} : vector<24x64xf32> to vector<8x64xf32>
    %168 = tpu.concatenate %166, %167 in 0 : vector<16x64xf32>, vector<8x64xf32> -> vector<24x64xf32>
    %169 = vector.extract_strided_slice %168 {offsets = [0, 0], sizes = [24, 32], strides = [1, 1]} : vector<24x64xf32> to vector<24x32xf32>
    %170 = vector.extract_strided_slice %168 {offsets = [0, 32], sizes = [24, 32], strides = [1, 1]} : vector<24x64xf32> to vector<24x32xf32>
    %171 = arith.mulf %153, %169 : vector<24x32xf32>
    %cst_96 = arith.constant dense<0.000000e+00> : vector<24x32xf32>
    %172 = tpu.matmul %171, %0, %cst_96 {dimension_numbers = #tpu.dot_dimension_numbers<[1], [0], [0], [1], [0, 0, 1, 1], [], []>} : vector<24x32xf32>, vector<32x32xf32>, vector<24x32xf32> -> vector<24x32xf32>
    %173 = arith.maximumf %158, %165 : vector<24x32xf32>
    %174 = arith.maximumf %173, %172 : vector<24x32xf32>
    %175 = arith.subf %158, %174 : vector<24x32xf32>
    %176 = math.exp %175 : vector<24x32xf32>
    %177 = arith.subf %165, %174 : vector<24x32xf32>
    %178 = math.exp %177 : vector<24x32xf32>
    %179 = arith.subf %172, %174 : vector<24x32xf32>
    %180 = math.exp %179 : vector<24x32xf32>
    %181 = arith.addf %176, %178 : vector<24x32xf32>
    %182 = arith.addf %181, %180 : vector<24x32xf32>
    %183 = arith.mulf %176, %156 : vector<24x32xf32>
    %184 = arith.mulf %178, %163 : vector<24x32xf32>
    %185 = arith.addf %183, %184 : vector<24x32xf32>
    %186 = arith.mulf %180, %170 : vector<24x32xf32>
    %187 = arith.addf %185, %186 : vector<24x32xf32>
    %188 = tpu.reciprocal %182 {approx = true} : vector<24x32xf32> -> vector<24x32xf32>
    %189 = arith.mulf %187, %188 : vector<24x32xf32>
    %cst_97 = arith.constant dense<0.000000e+00> : vector<24x32xf32>
    %190 = tpu.matmul %189, %131, %cst_97 {dimension_numbers = #tpu.dot_dimension_numbers<[1], [0], [0], [1], [0, 0, 1, 1], [], []>} : vector<24x32xf32>, vector<32x32xf32>, vector<24x32xf32> -> vector<24x32xf32>
    %191 = arith.addf %125, %190 : vector<24x32xf32>
    %192 = vector.broadcast %133 : vector<1x32xf32> to vector<24x32xf32>
    %193 = arith.addf %191, %192 : vector<24x32xf32>
    %cst_98 = arith.constant dense<0.000000e+00> : vector<24xf32>
    %194 = vector.multi_reduction <add>, %193, %cst_98 [1] : vector<24x32xf32> to vector<24xf32>
    %195 = vector.shape_cast %194 : vector<24xf32> to vector<24x1xf32>
    %cst_99 = arith.constant 3.200000e+01 : f32
    %196 = vector.broadcast %cst_99 : f32 to vector<24x1xf32>
    %197 = arith.divf %195, %196 : vector<24x1xf32>
    %198 = vector.broadcast %197 : vector<24x1xf32> to vector<24x32xf32>
    %199 = arith.subf %193, %198 : vector<24x32xf32>
    %200 = arith.mulf %199, %199 : vector<24x32xf32>
    %cst_100 = arith.constant dense<0.000000e+00> : vector<24xf32>
    %201 = vector.multi_reduction <add>, %200, %cst_100 [1] : vector<24x32xf32> to vector<24xf32>
    %202 = vector.shape_cast %201 : vector<24xf32> to vector<24x1xf32>
    %cst_101 = arith.constant 3.200000e+01 : f32
    %203 = vector.broadcast %cst_101 : f32 to vector<24x1xf32>
    %204 = arith.divf %202, %203 : vector<24x1xf32>
    %205 = vector.broadcast %197 : vector<24x1xf32> to vector<24x32xf32>
    %206 = arith.subf %193, %205 : vector<24x32xf32>
    %cst_102 = arith.constant 9.99999974E-6 : f32
    %207 = vector.broadcast %cst_102 : f32 to vector<24x1xf32>
    %208 = arith.addf %204, %207 : vector<24x1xf32>
    %209 = math.rsqrt %208 : vector<24x1xf32>
    %210 = vector.broadcast %209 : vector<24x1xf32> to vector<24x32xf32>
    %211 = arith.mulf %206, %210 : vector<24x32xf32>
    %212 = vector.broadcast %135 : vector<1x32xf32> to vector<24x32xf32>
    %213 = arith.mulf %211, %212 : vector<24x32xf32>
    %214 = vector.broadcast %137 : vector<1x32xf32> to vector<24x32xf32>
    %215 = arith.addf %213, %214 : vector<24x32xf32>
    %cst_103 = arith.constant dense<0.000000e+00> : vector<24x64xf32>
    %216 = tpu.matmul %215, %139, %cst_103 {dimension_numbers = #tpu.dot_dimension_numbers<[1], [0], [0], [1], [0, 0, 1, 1], [], []>} : vector<24x32xf32>, vector<32x64xf32>, vector<24x64xf32> -> vector<24x64xf32>
    %217 = vector.broadcast %141 : vector<1x64xf32> to vector<24x64xf32>
    %218 = arith.addf %216, %217 : vector<24x64xf32>
    %cst_104 = arith.constant 0.000000e+00 : f32
    %219 = vector.broadcast %cst_104 : f32 to vector<24x64xf32>
    %220 = arith.maximumf %218, %219 : vector<24x64xf32>
    %cst_105 = arith.constant dense<0.000000e+00> : vector<24x32xf32>
    %221 = tpu.matmul %220, %143, %cst_105 {dimension_numbers = #tpu.dot_dimension_numbers<[1], [0], [0], [1], [0, 0, 1, 1], [], []>} : vector<24x64xf32>, vector<64x32xf32>, vector<24x32xf32> -> vector<24x32xf32>
    %222 = arith.addf %215, %221 : vector<24x32xf32>
    %223 = vector.broadcast %145 : vector<1x32xf32> to vector<24x32xf32>
    %224 = arith.addf %222, %223 : vector<24x32xf32>
    %cst_106 = arith.constant dense<0.000000e+00> : vector<24xf32>
    %225 = vector.multi_reduction <add>, %224, %cst_106 [1] : vector<24x32xf32> to vector<24xf32>
    %226 = vector.shape_cast %225 : vector<24xf32> to vector<24x1xf32>
    %cst_107 = arith.constant 3.200000e+01 : f32
    %227 = vector.broadcast %cst_107 : f32 to vector<24x1xf32>
    %228 = arith.divf %226, %227 : vector<24x1xf32>
    %229 = vector.broadcast %228 : vector<24x1xf32> to vector<24x32xf32>
    %230 = arith.subf %224, %229 : vector<24x32xf32>
    %231 = arith.mulf %230, %230 : vector<24x32xf32>
    %cst_108 = arith.constant dense<0.000000e+00> : vector<24xf32>
    %232 = vector.multi_reduction <add>, %231, %cst_108 [1] : vector<24x32xf32> to vector<24xf32>
    %233 = vector.shape_cast %232 : vector<24xf32> to vector<24x1xf32>
    %cst_109 = arith.constant 3.200000e+01 : f32
    %234 = vector.broadcast %cst_109 : f32 to vector<24x1xf32>
    %235 = arith.divf %233, %234 : vector<24x1xf32>
    %236 = vector.broadcast %228 : vector<24x1xf32> to vector<24x32xf32>
    %237 = arith.subf %224, %236 : vector<24x32xf32>
    %cst_110 = arith.constant 9.99999974E-6 : f32
    %238 = vector.broadcast %cst_110 : f32 to vector<24x1xf32>
    %239 = arith.addf %235, %238 : vector<24x1xf32>
    %240 = math.rsqrt %239 : vector<24x1xf32>
    %241 = vector.broadcast %240 : vector<24x1xf32> to vector<24x32xf32>
    %242 = arith.mulf %237, %241 : vector<24x32xf32>
    %243 = vector.broadcast %147 : vector<1x32xf32> to vector<24x32xf32>
    %244 = arith.mulf %242, %243 : vector<24x32xf32>
    %245 = vector.broadcast %149 : vector<1x32xf32> to vector<24x32xf32>
    %246 = arith.addf %244, %245 : vector<24x32xf32>
    %247 = vector.extract_strided_slice %246 {offsets = [0, 0], sizes = [8, 32], strides = [1, 1]} : vector<24x32xf32> to vector<8x32xf32>
    %248 = vector.extract_strided_slice %246 {offsets = [8, 0], sizes = [8, 32], strides = [1, 1]} : vector<24x32xf32> to vector<8x32xf32>
    %249 = vector.extract_strided_slice %246 {offsets = [16, 0], sizes = [8, 32], strides = [1, 1]} : vector<24x32xf32> to vector<8x32xf32>
    %250 = tpu.concatenate %247, %248, %249 in 1 : vector<8x32xf32>, vector<8x32xf32>, vector<8x32xf32> -> vector<8x96xf32>
    %c0_111 = arith.constant 0 : index
    %c0_112 = arith.constant 0 : index
    %251 = vector.load %arg15[%c0_111, %c0_112] : memref<8x96xf32, #tpu.memory_space<vmem>>, vector<8x96xf32>
    tpu.vector_store %arg15[%c0_111, %c0_112], %250 {strides = array<i32>} : memref<8x96xf32, #tpu.memory_space<vmem>>, vector<8x96xf32>,
    return
  }
  func.func @transform_0(%arg0: i32) -> (i32, i32, i32) {
    %c0_i32 = arith.constant 0 : i32
    %c0_i32_0 = arith.constant 0 : i32
    %c0_i32_1 = arith.constant 0 : i32
    return %c0_i32, %arg0, %c0_i32_0 : i32, i32, i32
  }
  func.func @transform_1(%arg0: i32) -> (i32, i32) {
    %c0_i32 = arith.constant 0 : i32
    %c0_i32_0 = arith.constant 0 : i32
    %c0_i32_1 = arith.constant 0 : i32
    return %c0_i32, %c0_i32_0 : i32, i32
  }
  func.func @transform_2(%arg0: i32) -> (i32, i32, i32) {
    %c0_i32 = arith.constant 0 : i32
    %c0_i32_0 = arith.constant 0 : i32
    %c0_i32_1 = arith.constant 0 : i32
    %c0_i32_2 = arith.constant 0 : i32
    return %c0_i32, %c0_i32_0, %c0_i32_1 : i32, i32, i32
  }
  func.func @transform_3(%arg0: i32) -> (i32, i32, i32) {
    %c0_i32 = arith.constant 0 : i32
    %c0_i32_0 = arith.constant 0 : i32
    %c0_i32_1 = arith.constant 0 : i32
    %c0_i32_2 = arith.constant 0 : i32
    return %c0_i32, %c0_i32_0, %c0_i32_1 : i32, i32, i32
  }
  func.func @transform_4(%arg0: i32) -> (i32, i32, i32) {
    %c0_i32 = arith.constant 0 : i32
    %c0_i32_0 = arith.constant 0 : i32
    %c0_i32_1 = arith.constant 0 : i32
    %c0_i32_2 = arith.constant 0 : i32
    return %c0_i32, %c0_i32_0, %c0_i32_1 : i32, i32, i32
  }
  func.func @transform_5(%arg0: i32) -> (i32, i32, i32) {
    %c0_i32 = arith.constant 0 : i32
    %c0_i32_0 = arith.constant 0 : i32
    %c0_i32_1 = arith.constant 0 : i32
    %c0_i32_2 = arith.constant 0 : i32
    return %c0_i32, %c0_i32_0, %c0_i32_1 : i32, i32, i32
  }
  func.func @transform_6(%arg0: i32) -> (i32, i32, i32) {
    %c0_i32 = arith.constant 0 : i32
    %c0_i32_0 = arith.constant 0 : i32
    %c0_i32_1 = arith.constant 0 : i32
    %c0_i32_2 = arith.constant 0 : i32
    return %c0_i32, %c0_i32_0, %c0_i32_1 : i32, i32, i32
  }
  func.func @transform_7(%arg0: i32) -> (i32, i32, i32) {
    %c0_i32 = arith.constant 0 : i32
    %c0_i32_0 = arith.constant 0 : i32
    %c0_i32_1 = arith.constant 0 : i32
    %c0_i32_2 = arith.constant 0 : i32
    return %c0_i32, %c0_i32_0, %c0_i32_1 : i32, i32, i32
  }
  func.func @transform_8(%arg0: i32) -> (i32, i32, i32) {
    %c0_i32 = arith.constant 0 : i32
    %c0_i32_0 = arith.constant 0 : i32
    %c0_i32_1 = arith.constant 0 : i32
    %c0_i32_2 = arith.constant 0 : i32
    return %c0_i32, %c0_i32_0, %c0_i32_1 : i32, i32, i32
  }
  func.func @transform_9(%arg0: i32) -> (i32, i32, i32) {
    %c0_i32 = arith.constant 0 : i32
    %c0_i32_0 = arith.constant 0 : i32
    %c0_i32_1 = arith.constant 0 : i32
    %c0_i32_2 = arith.constant 0 : i32
    return %c0_i32, %c0_i32_0, %c0_i32_1 : i32, i32, i32
  }
  func.func @transform_10(%arg0: i32) -> (i32, i32, i32) {
    %c0_i32 = arith.constant 0 : i32
    %c0_i32_0 = arith.constant 0 : i32
    %c0_i32_1 = arith.constant 0 : i32
    %c0_i32_2 = arith.constant 0 : i32
    return %c0_i32, %c0_i32_0, %c0_i32_1 : i32, i32, i32
  }
  func.func @transform_11(%arg0: i32) -> (i32, i32, i32) {
    %c0_i32 = arith.constant 0 : i32
    %c0_i32_0 = arith.constant 0 : i32
    %c0_i32_1 = arith.constant 0 : i32
    %c0_i32_2 = arith.constant 0 : i32
    return %c0_i32, %c0_i32_0, %c0_i32_1 : i32, i32, i32
  }
  func.func @transform_12(%arg0: i32) -> (i32, i32, i32) {
    %c0_i32 = arith.constant 0 : i32
    %c0_i32_0 = arith.constant 0 : i32
    %c0_i32_1 = arith.constant 0 : i32
    %c0_i32_2 = arith.constant 0 : i32
    return %c0_i32, %c0_i32_0, %c0_i32_1 : i32, i32, i32
  }
  func.func @transform_13(%arg0: i32) -> (i32, i32, i32) {
    %c0_i32 = arith.constant 0 : i32
    %c0_i32_0 = arith.constant 0 : i32
    %c0_i32_1 = arith.constant 0 : i32
    %c0_i32_2 = arith.constant 0 : i32
    return %c0_i32, %c0_i32_0, %c0_i32_1 : i32, i32, i32
  }
  func.func @transform_14(%arg0: i32) -> (i32, i32) {
    %c0_i32 = arith.constant 0 : i32
    %c0_i32_0 = arith.constant 0 : i32
    return %arg0, %c0_i32 : i32, i32
  }
}

</mosaic_0001>

<bundles_post_ra>
// kernel: tpu_custom_call.1
= control target key start
LH: loop header
LB: loop body
LE: loop exit
PB: predicated region body
PF: predicated region fallthrough
CT: control target
= control target key end

     0   :  { %19 = vsyncpa [#allocation3], 0  ;;  %s2074_s0 = inlined_call_operand.hbm [shape: f32[3,8,32], index: 0, kind: input, shape index: {}]   ;;  %s2075_s1 = inlined_call_operand.hbm [shape: f32[32,32], index: 1, kind: input, shape index: {}]   ;;  %s2076_s2 = inlined_call_operand.vmem [shape: f32[2,32,96], index: 2, kind: input, shape index: {}]   ;;  %s2077_s3 = inlined_call_operand.vmem [shape: f32[2,1,96], index: 3, kind: input, shape index: {}]   ;;  %s2078_s4 = inlined_call_operand.vmem [shape: f32[2,32,32], index: 4, kind: input, shape index: {}]   ;;  %s2079_s5 = inlined_call_operand.hbm [shape: f32[2,1,32], index: 5, kind: input, shape index: {}]   ;;  %s2080_s6 = inlined_call_operand.vmem [shape: f32[2,1,32], index: 6, kind: input, shape index: {}]   ;;  %s2081_s7 = inlined_call_operand.hbm [shape: f32[2,1,32], index: 7, kind: input, shape index: {}]   ;;  %s2082_s8 = inlined_call_operand.vmem [shape: f32[2,32,64], index: 8, kind: input, shape index: {}]   ;;  %s2083_s9 = inlined_call_operand.vmem [shape: f32[2,1,64], index: 9, kind: input, shape index: {}]   ;;  %s2084_s10 = inlined_call_operand.vmem [shape: f32[2,64,32], index: 10, kind: input, shape index: {}]   ;;  %s2085_s11 = inlined_call_operand.vmem [shape: f32[2,1,32], index: 11, kind: input, shape index: {}]   ;;  %s2086_s12 = inlined_call_operand.vmem [shape: f32[2,1,32], index: 12, kind: input, shape index: {}]   ;;  %s2087_s13 = inlined_call_operand.hbm [shape: f32[2,1,32], index: 13, kind: input, shape index: {}]   ;;  %s2088_s14 = inlined_call_operand.hbm [shape: f32[8,96], index: 14, kind: output, shape index: {}]  }
   0x1   :  { %20 = vsyncpa [#allocation6], 0 }
   0x2   :  { %21 = vsyncpa [#allocation9], 0 }
   0x3   :  { %22 = vsyncpa [#allocation4], 0  ;;  %s40_s15 = sshll.u32 %s2075_s1, 4  ;;  %s1611_s16 = smov [#allocation5]   ;;  %s41_s15 = int_to_ptr.hbm [resolvable:$true] %s40_s15 }
   0x4   :  { %s42_s17 = sshll.u32 %s1611_s16, 4  ;;  %s1612_s18 = smov 128   ;;  %s43_s17 = int_to_ptr.vmem [resolvable:$true] %s42_s17 }
   0x5   :  { %s1613_s19 = smov 8   ;;  %s74_s22 = sshll.u32 %s2081_s7, 4  ;;  %s75_s22 = int_to_ptr.hbm [resolvable:$true] %s74_s22 }
   0x6   :  { %48 = dma.hbm_to_vmem [thread:$0]  %s41_s15, 512, %s43_s17, [#allocation6], %s1612_s18, %s1612_s18, %s1613_s19  }
   0x7   :  { %s1614_s23 = smov [#allocation8]   ;;  %s27_s27 = sshll.u32 %s2074_s0, 4  ;;  %s28_s27 = int_to_ptr.hbm [resolvable:$true] %s27_s27 }
   0x8   :  { %s76_s24 = sshll.u32 %s1614_s23, 4  ;;  %s1615_s1 = smov 16   ;;  %s77_s24 = int_to_ptr.vmem [resolvable:$true] %s76_s24 }
   0x9   :  { %s1616_s28 = smov 1   ;;  %s59_s15 = sshll.u32 %s2079_s5, 4  ;;  %s60_s15 = int_to_ptr.hbm [resolvable:$true] %s59_s15 }
   0xa   :  { %82 = dma.hbm_to_vmem [thread:$0]  %s75_s22, 32, %s77_s24, [#allocation9], %s1615_s1, %s1615_s1, %s1616_s28  }
   0xb   :  { %s1617_s16 = smov [#allocation2]   ;;  %s1618_s7 = smov [#allocation7]  }
   0xc   :  { %s29_s17 = sshll.u32 %s1617_s16, 4  ;;  %s61_s20 = sshll.u32 %s1618_s7, 4  ;;  %s30_s17 = int_to_ptr.vmem [resolvable:$true] %s29_s17  ;;  %s62_s20 = int_to_ptr.vmem [resolvable:$true] %s61_s20 }
   0xd   :  { %35 = dma.hbm_to_vmem [thread:$0]  %s28_s27, 384, %s30_s17, [#allocation3], %s1612_s18, %s1612_s18, %s1613_s19  }
   0xe   :  { %s97_s0 = sshll.u32 %s2087_s13, 4  ;;  %s1619_s25 = smov [#allocation10]   ;;  %s98_s0 = int_to_ptr.hbm [resolvable:$true] %s97_s0 }
   0xf   :  { %67 = dma.hbm_to_vmem [thread:$0]  %s60_s15, 32, %s62_s20, [#allocation6], %s1615_s1, %s1615_s1, %s1616_s28  }
  0x10   :  { %s99_s22 = sshll.u32 %s1619_s25, 4  ;;  %s100_s22 = int_to_ptr.vmem [resolvable:$true] %s99_s22 }
  0x11   :  { %105 = dma.hbm_to_vmem [thread:$0]  %s98_s0, 32, %s100_s22, [#allocation9], %s1615_s1, %s1615_s1, %s1616_s28  }
  0x12   :  { %1603 = dma.done.wait [#allocation3], 384  }
  0x13   :  { %1604 = vsyncadd [#allocation3], 4294966912 }
  0x14   :  { %1605 = dma.done.wait [#allocation6], 544  }
  0x15   :  { %1606 = vsyncadd [#allocation6], 4294966752 }
  0x16   :  { %1607 = dma.done.wait [#allocation9], 64  }
  0x17   :  { %1608 = vsyncadd [#allocation9], 4294967232  ;;  %v139_v0 = vld [vmem:[%s2076_s2 + $0x18] sm:$0xff]  ;;  %v138_v1 = vld [vmem:[%s2076_s2 + $0x10] sm:$0xff]  ;;  %vm167_vm0 = vcmask 261120   ;;  %s1620_s30 = smov 96  }
  0x18   :  { %189 = vmatpush.msra.mxu0 %v139_v0  ;;  %1347 = vmatpush.msra.mxu2 %v139_v0  ;;  %v1721_v2 = vld [vmem:[#allocation2] sm:$0xff]  ;;  %v1723_v3 = vld [vmem:[#allocation2 + $0x8] sm:$0xff]  ;;  %v1739_v8 = vld [vmem:[#allocation2 + $0x10] sm:$0xff]  ;;  %s1621_s15 = smov 64   ;;  %vm568_vm11 = vcmask 523264   ;;  %s1624_s17 = smov [#allocation11]  }
  0x19   :  { %v137_v4 = vld [vmem:[%s2076_s2 + $0x8] sm:$0xff]  ;;  %v136_v5 = vld [vmem:[%s2076_s2] sm:$0xff]  ;;  %v133_v6 = vmax.f32 %v1721_v2, 0.0  ;;  %v134_v7 = vmax.f32 %v1723_v3, 0.0  ;;  %v135_v9 = vmax.f32 %v1739_v8, 0.0  ;;  %v1754_v17 = vld [vmem:[#allocation5 + $0x18] sm:$0xff] }
  0x1a   :  { %190 = vmatpush.msra.mxu0 %v138_v1  ;;  %1348 = vmatpush.msra.mxu2 %v138_v1  ;;  %v1369_v10 = vld [vmem:[%s2077_s3] ss:$0 sm:$0xff]  ;;  %v1759_v18 = vld [vmem:[#allocation5 + $0x10] sm:$0xff]  ;;  %v1768_v20 = vld [vmem:[#allocation5] sm:$0xff]  ;;  %s1266_s7 = sshll.u32 %s1624_s17, 4  ;;  %s1268_s23 = sshll.u32 %s2088_s14, 4  ;;  %s1267_s7 = int_to_ptr.vmem [resolvable:$true] %s1266_s7  ;;  %s1269_s23 = int_to_ptr.hbm [resolvable:$true] %s1268_s23 }
  0x1b   :  { %239 = vmatpush.msra.mxu1 %v1754_v17  ;;  %1351 = vmatpush.msra.mxu3 %v1754_v17  ;;  %v1763_v19 = vld [vmem:[#allocation5 + $0x8] sm:$0xff]  ;;  %v144_v34 = vld [vmem:[%s2078_s4 + $0x18] sm:$0xff]  ;;  %v143_v35 = vld [vmem:[%s2078_s4 + $0x10] sm:$0xff] }
  0x1c   :  { %191 = vmatpush.msra.mxu0 %v137_v4  ;;  %1349 = vmatpush.msra.mxu2 %v137_v4  ;;  %v142_v38 = vld [vmem:[%s2078_s4 + $0x8] sm:$0xff]  ;;  %v141_v39 = vld [vmem:[%s2078_s4] sm:$0xff] }
  0x1d   :  { %240 = vmatpush.msra.mxu1 %v1759_v18  ;;  %1352 = vmatpush.msra.mxu3 %v1759_v18 }
  0x1e   :  { %192 = vmatpush.msra.mxu0 %v136_v5  ;;  %1350 = vmatpush.msra.mxu2 %v136_v5 }
  0x1f   :  { %1280 = vmatmul.msk.f32.vlgmr.msra.gmra.mxu0 %vm167_vm0, %v133_v6  ;;  %1281 = vmatmul.msk.f32.vlgmr.msra.gmra.mxu2 %vm167_vm0, %v134_v7 }
  0x20   :  { %277 = vmatpush.msrb.mxu2 %v1754_v17  ;;  %241 = vmatpush.msra.mxu1 %v1763_v19 }
  0x21   :  { %1353 = vmatpush.msra.mxu3 %v1763_v19  ;;  %419 = vmatpush.msrb.mxu0 %v144_v34 }
  0x22   :  { %278 = vmatpush.msrb.mxu2 %v1759_v18  ;;  %242 = vmatpush.msra.mxu1 %v1768_v20 }
  0x23   :  { %1354 = vmatpush.msra.mxu3 %v1768_v20  ;;  %420 = vmatpush.msrb.mxu0 %v143_v35 }
  0x24   :  { %279 = vmatpush.msrb.mxu2 %v1763_v19 }
  0x25   :  { %315 = vmatpush.msrb.mxu3 %v1754_v17  ;;  %421 = vmatpush.msrb.mxu0 %v142_v38 }
  0x26   :  { %280 = vmatpush.msrb.mxu2 %v1768_v20 }
  0x27   :  { %1282 = vmatmul.msk.f32.gmra.mxu2 %vm167_vm0, %v135_v9  ;;  %316 = vmatpush.msrb.mxu3 %v1759_v18 }
  0x28   :  { %422 = vmatpush.msrb.mxu0 %v141_v39 }
  0x29   :  { %317 = vmatpush.msrb.mxu3 %v1763_v19 }
  0x2a   :  { %805 = vmatpush.msra.mxu0 %v1754_v17 }
  0x2b   :  { %318 = vmatpush.msrb.mxu3 %v1768_v20 }
  0x2c   :  { %806 = vmatpush.msra.mxu0 %v1759_v18 }
  0x2e   :  { %807 = vmatpush.msra.mxu0 %v1763_v19 }
  0x30   :  { %808 = vmatpush.msra.mxu0 %v1768_v20 }
  0x9c   :  { %v194_v11 = vpop.f32.mrf.mxu0 }
  0x9d   :  { %v195_v12 = vadd.f32 %v1369_v10, %v194_v11 }
  0x9f   :  { %206 = vrot.lane.b32.xlu1 %v195_v12, %s1620_s30 }
  0xa2   :  { %v197_v13 = vpop.f32.mrf.mxu2 }
  0xa3   :  { %v198_v14 = vadd.f32 %v1369_v10, %v197_v13 }
  0xa5   :  { %208 = vrot.lane.b32.xlu0 %v198_v14, %s1620_s30 }
  0xa7   :  { %368 = vrot.lane.b32.xlu1 %v195_v12, %s1621_s15 }
  0xaa   :  { %v200_v15 = vpop.f32.mrf.mxu2 }
  0xab   :  { %v201_v16 = vadd.f32 %v1369_v10, %v200_v15 }
  0xad   :  { %372 = vrot.lane.b32.xlu2 %v201_v16, %s1621_s15  ;;  %210 = vrot.lane.b32.xlu0 %v201_v16, %s1620_s30 }
  0xb5   :  { %370 = vrot.lane.b32.xlu2 %v198_v14, %s1621_s15 }
 0x107   :  { %v373_v54 = vpop.permute.xlu2 %372 }
 0x111   :  { %v207_v21 = vpop.permute.xlu1 %206 }
 0x112   :  { %v215_v22 = vmul.f32 %v207_v21, %v195_v12  ;;  %v254_v28 = vmul.f32 %v207_v21, %v198_v14  ;;  %v293_v32 = vmul.f32 %v207_v21, %v201_v16 }
 0x114   :  { %1283 = vmatmul.msk.f32.vlgmr.msra.gmra.mxu1 %vm167_vm0, %v215_v22 }
 0x117   :  { %v209_v23 = vpop.permute.xlu0 %208 }
 0x118   :  { %v216_v24 = vmul.f32 %v209_v23, %v198_v14  ;;  %v291_v29 = vmul.f32 %v209_v23, %v195_v12  ;;  %v255_v30 = vmul.f32 %v209_v23, %v201_v16 }
 0x119   :  { %v369_v0 = vpop.permute.xlu1 %368 }
 0x11a   :  { %1284 = vmatmul.msk.f32.vlgmr.msra.gmra.mxu3 %vm167_vm0, %v216_v24  ;;  %v371_v24 = vpop.permute.xlu2 %370 }
 0x11f   :  { %v211_v25 = vpop.permute.xlu0 %210 }
 0x120   :  { %v217_v26 = vmul.f32 %v211_v25, %v201_v16  ;;  %v253_v27 = vmul.f32 %v211_v25, %v195_v12  ;;  %v292_v31 = vmul.f32 %v211_v25, %v198_v14 }
 0x122   :  { %1285 = vmatmul.msk.f32.gmra.mxu3 %vm167_vm0, %v217_v26  ;;  %1286 = vmatmul.msk.f32.vlgmr.msrb.gmra.mxu2 %vm167_vm0, %v253_v27 }
 0x12a   :  { %1287 = vmatmul.msk.f32.gmra.mxu2 %vm167_vm0, %v254_v28  ;;  %1289 = vmatmul.msk.f32.vlgmr.msrb.gmra.mxu3 %vm167_vm0, %v291_v29 }
 0x132   :  { %1288 = vmatmul.msk.f32.gmra.mxu2 %vm167_vm0, %v255_v30  ;;  %1290 = vmatmul.msk.f32.gmra.mxu3 %vm167_vm0, %v292_v31 }
 0x13a   :  { %1291 = vmatmul.msk.f32.gmra.mxu3 %vm167_vm0, %v293_v32 }
 0x191   :  { %v244_v40 = vpop.f32.mrf.mxu1 }
 0x19d   :  { %v247_v33 = vpop.f32.mrf.mxu3 }
 0x1a5   :  { %v250_v36 = vpop.f32.mrf.mxu3  ;;  %v282_v37 = vpop.f32.mrf.mxu2 }
 0x1a6   :  { %v329_v41 = vmax.f32 %v244_v40, %v282_v37 }
 0x1ad   :  { %v320_v42 = vpop.f32.mrf.mxu3  ;;  %v285_v44 = vpop.f32.mrf.mxu2 }
 0x1ae   :  { %v332_v43 = vmax.f32 %v329_v41, %v320_v42  ;;  %v330_v51 = vmax.f32 %v247_v33, %v285_v44 }
 0x1b0   :  { %v335_v45 = vsub.f32 %v244_v40, %v332_v43  ;;  %v344_v46 = vsub.f32 %v282_v37, %v332_v43  ;;  %v353_v47 = vsub.f32 %v320_v42, %v332_v43 }
 0x1b2   :  { %v338_v48 = vmul.f32 1.442695, %v335_v45  ;;  %v347_v49 = vmul.f32 1.442695, %v344_v46  ;;  %v356_v50 = vmul.f32 1.442695, %v353_v47 }
 0x1b4   :  { %1385 = vpow2.f32 %v338_v48 }
 0x1b5   :  { %1387 = vpow2.f32 %v347_v49  ;;  %v323_v52 = vpop.f32.mrf.mxu3  ;;  %v288_v58 = vpop.f32.mrf.mxu2 }
 0x1b6   :  { %v333_v53 = vmax.f32 %v330_v51, %v323_v52  ;;  %1389 = vpow2.f32 %v356_v50  ;;  %v331_v4 = vmax.f32 %v250_v36, %v288_v58 }
 0x1b8   :  { %v336_v55 = vsub.f32 %v247_v33, %v333_v53  ;;  %v345_v56 = vsub.f32 %v285_v44, %v333_v53  ;;  %v354_v57 = vsub.f32 %v323_v52, %v333_v53 }
 0x1ba   :  { %v1386_v59 = vpop.eup %1385  ;;  %v340_v60 = vmul.f32 1.442695, %v336_v55  ;;  %v349_v61 = vmul.f32 1.442695, %v345_v56  ;;  %v358_v63 = vmul.f32 1.442695, %v354_v57 }
 0x1bb   :  { %v1388_v62 = vpop.eup %1387  ;;  %v377_v11 = vmul.f32 %v1386_v59, %v369_v0  ;;  %v1370_v56 = vld [vmem:[#allocation7] ss:$0 sm:$0xff] }
 0x1bc   :  { %v362_v1 = vadd.f32 %v1388_v62, %v1386_v59  ;;  %1391 = vpow2.f32 %v340_v60  ;;  %v1390_v5 = vpop.eup %1389  ;;  %v380_v12 = vmul.f32 %v1388_v62, %v373_v54 }
 0x1bd   :  { %1393 = vpow2.f32 %v349_v61  ;;  %v326_v10 = vpop.f32.mrf.mxu3  ;;  %v386_v28 = vmul.f32 %v1390_v5, %v371_v24 }
 0x1be   :  { %v365_v13 = vadd.f32 %v1390_v5, %v362_v1  ;;  %v334_v14 = vmax.f32 %v331_v4, %v326_v10  ;;  %1395 = vpow2.f32 %v358_v63  ;;  %v383_v22 = vadd.f32 %v380_v12, %v377_v11 }
 0x1c0   :  { %1397 = vrcp.f32 %v365_v13  ;;  %v337_v15 = vsub.f32 %v250_v36, %v334_v14  ;;  %v346_v16 = vsub.f32 %v288_v58, %v334_v14  ;;  %v355_v21 = vsub.f32 %v326_v10, %v334_v14 }
 0x1c1   :  { %v389_v32 = vadd.f32 %v386_v28, %v383_v22 }
 0x1c2   :  { %v1392_v23 = vpop.eup %1391  ;;  %v342_v25 = vmul.f32 1.442695, %v337_v15  ;;  %v351_v26 = vmul.f32 1.442695, %v346_v16  ;;  %v360_v29 = vmul.f32 1.442695, %v355_v21 }
 0x1c3   :  { %v1394_v27 = vpop.eup %1393  ;;  %v378_v33 = vmul.f32 %v1392_v23, %v371_v24 }
 0x1c4   :  { %v363_v30 = vadd.f32 %v1394_v27, %v1392_v23  ;;  %1399 = vpow2.f32 %v342_v25  ;;  %v1396_v31 = vpop.eup %1395  ;;  %v381_v34 = vmul.f32 %v1394_v27, %v369_v0 }
 0x1c5   :  { %1401 = vpow2.f32 %v351_v26  ;;  %v387_v41 = vmul.f32 %v1396_v31, %v373_v54 }
 0x1c6   :  { %v1398_v35 = vpop.eup %1397  ;;  %v366_v37 = vadd.f32 %v1396_v31, %v363_v30  ;;  %1403 = vpow2.f32 %v360_v29  ;;  %v384_v38 = vadd.f32 %v381_v34, %v378_v33  ;;  %v151_v30 = vld [vmem:[%s2082_s8 + $0x18] sm:$0xff]  ;;  %v150_v31 = vld [vmem:[%s2082_s8 + $0x10] sm:$0xff]  ;;  %v148_v33 = vld [vmem:[%s2082_s8] sm:$0xff] }
 0x1c7   :  { %v395_v36 = vmul.f32 %v1398_v35, %v389_v32  ;;  %551 = vmatpush.msrb.mxu1 %v151_v30  ;;  %v149_v32 = vld [vmem:[%s2082_s8 + $0x8] sm:$0xff] }
 0x1c8   :  { %1405 = vrcp.f32 %v366_v37  ;;  %v390_v44 = vadd.f32 %v387_v41, %v384_v38 }
 0x1c9   :  { %1292 = vmatmul.msk.f32.vlgmr.msrb.gmra.mxu0 %vm167_vm0, %v395_v36  ;;  %552 = vmatpush.msrb.mxu1 %v150_v31 }
 0x1ca   :  { %v1400_v39 = vpop.eup %1399 }
 0x1cb   :  { %v1402_v40 = vpop.eup %1401  ;;  %v379_v45 = vmul.f32 %v1400_v39, %v373_v54  ;;  %553 = vmatpush.msrb.mxu1 %v149_v32 }
 0x1cc   :  { %v364_v42 = vadd.f32 %v1402_v40, %v1400_v39  ;;  %v1404_v43 = vpop.eup %1403  ;;  %v382_v46 = vmul.f32 %v1402_v40, %v371_v24 }
 0x1cd   :  { %v388_v51 = vmul.f32 %v1404_v43, %v369_v0  ;;  %554 = vmatpush.msrb.mxu1 %v148_v33 }
 0x1ce   :  { %v1406_v47 = vpop.eup %1405  ;;  %v367_v48 = vadd.f32 %v1404_v43, %v364_v42  ;;  %v385_v50 = vadd.f32 %v382_v46, %v379_v45  ;;  %v160_v42 = vld [vmem:[%s2084_s10 + $0x38] sm:$0xff]  ;;  %v159_v43 = vld [vmem:[%s2084_s10 + $0x30] sm:$0xff]  ;;  %v158_v45 = vld [vmem:[%s2084_s10 + $0x28] sm:$0xff] }
 0x1cf   :  { %v396_v49 = vmul.f32 %v1406_v47, %v390_v44  ;;  %843 = vmatpush.msra.mxu1 %v1754_v17  ;;  %586 = vmatpush.msra.mxu2 %v160_v42 }
 0x1d0   :  { %1407 = vrcp.f32 %v367_v48  ;;  %v391_v52 = vadd.f32 %v388_v51, %v385_v50 }
 0x1d1   :  { %1293 = vmatmul.msk.f32.gmra.mxu0 %vm167_vm0, %v396_v49  ;;  %844 = vmatpush.msra.mxu1 %v1759_v18  ;;  %v157_v49 = vld [vmem:[%s2084_s10 + $0x20] sm:$0xff] }
 0x1d2   :  { %587 = vmatpush.msra.mxu2 %v159_v43 }
 0x1d3   :  { %845 = vmatpush.msra.mxu1 %v1763_v19 }
 0x1d4   :  { %588 = vmatpush.msra.mxu2 %v158_v45 }
 0x1d5   :  { %846 = vmatpush.msra.mxu1 %v1768_v20 }
 0x1d6   :  { %v1408_v53 = vpop.eup %1407  ;;  %589 = vmatpush.msra.mxu2 %v157_v49 }
 0x1d7   :  { %v397_v55 = vmul.f32 %v1408_v53, %v391_v52  ;;  %v156_v53 = vld [vmem:[%s2084_s10 + $0x18] sm:$0xff] }
 0x1d8   :  { %590 = vmatpush.msra.mxu2 %v156_v53 }
 0x1d9   :  { %1294 = vmatmul.msk.f32.gmra.mxu0 %vm167_vm0, %v397_v55 }
 0x246   :  { %v424_v57 = vpop.f32.mrf.mxu0 }
 0x247   :  { %v433_v58 = vadd.f32 %v424_v57, %v133_v6  ;;  %v1622_v6 = vmov 32.0   ;;  %v1371_v57 = vld [vmem:[%s2080_s6] ss:$0 sm:$0xff] }
 0x248   :  { %1409 = vrcp.f32 %v1622_v6 }
 0x249   :  { %v439_v54 = vadd.f32 %v1370_v56, %v433_v58  ;;  %v155_v58 = vld [vmem:[%s2084_s10 + $0x10] sm:$0xff] }
 0x24a   :  { %591 = vmatpush.msra.mxu2 %v155_v58 }
 0x24b   :  { %v442_v59 = vsel %vm167_vm0, %v439_v54, 0.0 }
 0x24c   :  { %443 = vadd.xlane.f32.xlu0 %v442_v59 }
 0x24e   :  { %v427_v60 = vpop.f32.mrf.mxu0  ;;  %v1410_v5 = vpop.eup %1409 }
 0x24f   :  { %v434_v61 = vadd.f32 %v427_v60, %v134_v7  ;;  %v452_v10 = vmul.f32 32.0, %v1410_v5  ;;  %vm456_vm1 = vweird.f32 %v1410_v5 }
 0x251   :  { %v440_v62 = vadd.f32 %v1370_v56, %v434_v61  ;;  %v453_v11 = vsub.f32 1.0, %v452_v10  ;;  %v1372_v61 = vld [vmem:[#allocation8] ss:$0 sm:$0xff] }
 0x253   :  { %v445_v63 = vsel %vm167_vm0, %v440_v62, 0.0  ;;  %v454_v12 = vmul.f32 %v1410_v5, %v453_v11 }
 0x254   :  { %446 = vadd.xlane.f32.xlu1 %v445_v63 }
 0x255   :  { %v455_v3 = vadd.f32 %v1410_v5, %v454_v12 }
 0x256   :  { %v430_v0 = vpop.f32.mrf.mxu0 }
 0x257   :  { %v435_v1 = vadd.f32 %v430_v0, %v135_v9  ;;  %v1815_v7 = vsel %vm456_vm1, %v1410_v5, %v455_v3 }
 0x259   :  { %v441_v4 = vadd.f32 %v1370_v56, %v435_v1 }
 0x25b   :  { %v448_v2 = vsel %vm167_vm0, %v441_v4, 0.0 }
 0x25c   :  { %449 = vadd.xlane.f32.xlu2 %v448_v2 }
 0x2bf   :  { %v444_v13 = vpop.xlane.xlu0 %443 }
 0x2c0   :  { %v458_v14 = vmul.f32 %v1815_v7, %v444_v13 }
 0x2c2   :  { %v1818_v15 = vsub.f32 %v439_v54, %v458_v14 }
 0x2c4   :  { %v464_v8 = vmul.f32 %v1818_v15, %v1818_v15 }
 0x2c6   :  { %v467_v9 = vsel %vm167_vm0, %v464_v8, 0.0 }
 0x2c7   :  { %v447_v16 = vpop.xlane.xlu1 %446  ;;  %468 = vadd.xlane.f32.xlu2 %v467_v9 }
 0x2c8   :  { %v459_v21 = vmul.f32 %v1815_v7, %v447_v16 }
 0x2ca   :  { %v1824_v22 = vsub.f32 %v440_v62, %v459_v21  ;;  %v154_v62 = vld [vmem:[%s2084_s10 + $0x8] sm:$0xff] }
 0x2cb   :  { %592 = vmatpush.msra.mxu2 %v154_v62 }
 0x2cc   :  { %v465_v23 = vmul.f32 %v1824_v22, %v1824_v22 }
 0x2ce   :  { %v470_v24 = vsel %vm167_vm0, %v465_v23, 0.0 }
 0x2cf   :  { %471 = vadd.xlane.f32.xlu0 %v470_v24  ;;  %v450_v25 = vpop.xlane.xlu2 %449  ;;  %v1373_v24 = vld [vmem:[%s2083_s9] ss:$0 sm:$0xff] }
 0x2d0   :  { %v460_v26 = vmul.f32 %v1815_v7, %v450_v25 }
 0x2d2   :  { %v1830_v27 = vsub.f32 %v441_v4, %v460_v26 }
 0x2d4   :  { %v466_v28 = vmul.f32 %v1830_v27, %v1830_v27 }
 0x2d6   :  { %v473_v29 = vsel %vm167_vm0, %v466_v28, 0.0 }
 0x2d7   :  { %474 = vadd.xlane.f32.xlu1 %v473_v29 }
 0x33a   :  { %v469_v34 = vpop.xlane.xlu2 %468 }
 0x33b   :  { %v476_v35 = vmul.f32 %v469_v34, %v1815_v7 }
 0x33d   :  { %v479_v37 = vadd.f32 1e-05, %v476_v35 }
 0x33f   :  { %1411 = vrsqrt.f32 %v479_v37  ;;  %vm488_vm3 = vweird.f32 %v479_v37 }
 0x342   :  { %v472_v36 = vpop.xlane.xlu0 %471 }
 0x343   :  { %v477_v38 = vmul.f32 %v472_v36, %v1815_v7 }
 0x345   :  { %v1412_v39 = vpop.eup %1411  ;;  %v480_v40 = vadd.f32 1e-05, %v477_v38 }
 0x346   :  { %v483_v41 = vmul.f32 %v1412_v39, %v479_v37  ;;  %vm489_vm2 = vweird.f32 %v1412_v39 }
 0x347   :  { %1413 = vrsqrt.f32 %v480_v40  ;;  %vm490_vm4 = vmor %vm488_vm3, %vm489_vm2  ;;  %vm498_vm6 = vweird.f32 %v480_v40 }
 0x348   :  { %v484_v44 = vmul.f32 %v1412_v39, %v483_v41 }
 0x34a   :  { %v485_v46 = vmul.f32 0.5, %v484_v44  ;;  %v475_v47 = vpop.xlane.xlu1 %474 }
 0x34b   :  { %v478_v48 = vmul.f32 %v475_v47, %v1815_v7 }
 0x34c   :  { %v486_v50 = vsub.f32 1.5, %v485_v46 }
 0x34d   :  { %v1414_v51 = vpop.eup %1413  ;;  %v481_v52 = vadd.f32 1e-05, %v478_v48 }
 0x34e   :  { %v487_v55 = vmul.f32 %v1412_v39, %v486_v50  ;;  %v493_v56 = vmul.f32 %v1414_v51, %v480_v40  ;;  %vm499_vm5 = vweird.f32 %v1414_v51 }
 0x34f   :  { %1415 = vrsqrt.f32 %v481_v52  ;;  %vm500_vm7 = vmor %vm498_vm6, %vm499_vm5  ;;  %vm508_vm9 = vweird.f32 %v481_v52 }
 0x350   :  { %v491_v54 = vsel %vm490_vm4, %v1412_v39, %v487_v55  ;;  %v494_v59 = vmul.f32 %v1414_v51, %v493_v56 }
 0x351   :  { %v512_v60 = vmul.f32 %v491_v54, %v1818_v15  ;;  %v1304_v54 = vld [vmem:[%s2076_s2 + $0x38] sm:$0xff] }
 0x352   :  { %v495_v63 = vmul.f32 0.5, %v494_v59  ;;  %755 = vmatpush.msra.mxu3 %v1304_v54  ;;  %v1303_v59 = vld [vmem:[%s2076_s2 + $0x30] sm:$0xff] }
 0x353   :  { %v518_v0 = vmul.f32 %v1371_v57, %v512_v60  ;;  %v1302_v60 = vld [vmem:[%s2076_s2 + $0x28] sm:$0xff] }
 0x354   :  { %v496_v1 = vsub.f32 1.5, %v495_v63  ;;  %756 = vmatpush.msra.mxu3 %v1303_v59  ;;  %v1309_v59 = vld [vmem:[%s2078_s4 + $0x38] sm:$0xff] }
 0x355   :  { %v1416_v4 = vpop.eup %1415  ;;  %v524_v2 = vadd.f32 %v1372_v61, %v518_v0 }
 0x356   :  { %v497_v6 = vmul.f32 %v1414_v51, %v496_v1  ;;  %v503_v5 = vmul.f32 %v1416_v4, %v481_v52  ;;  %vm509_vm8 = vweird.f32 %v1416_v4  ;;  %757 = vmatpush.msra.mxu3 %v1302_v60  ;;  %v1308_v60 = vld [vmem:[%s2078_s4 + $0x30] sm:$0xff] }
 0x357   :  { %1295 = vmatmul.msk.f32.vlgmr.msrb.gmra.mxu1 %vm167_vm0, %v524_v2  ;;  %vm510_vm10 = vmor %vm508_vm9, %vm509_vm8 }
 0x358   :  { %v501_v10 = vsel %vm500_vm7, %v1414_v51, %v497_v6  ;;  %v504_v11 = vmul.f32 %v1416_v4, %v503_v5 }
 0x359   :  { %v513_v12 = vmul.f32 %v501_v10, %v1824_v22  ;;  %v153_v22 = vld [vmem:[%s2084_s10] sm:$0xff] }
 0x35a   :  { %v505_v3 = vmul.f32 0.5, %v504_v11  ;;  %593 = vmatpush.msra.mxu2 %v153_v22 }
 0x35b   :  { %v519_v13 = vmul.f32 %v1371_v57, %v513_v12 }
 0x35c   :  { %v506_v14 = vsub.f32 1.5, %v505_v3  ;;  %881 = vmatpush.msrb.mxu2 %v1754_v17 }
 0x35d   :  { %v525_v15 = vadd.f32 %v1372_v61, %v519_v13 }
 0x35e   :  { %v507_v8 = vmul.f32 %v1416_v4, %v506_v14  ;;  %882 = vmatpush.msrb.mxu2 %v1759_v18 }
 0x35f   :  { %1296 = vmatmul.msk.f32.gmra.mxu1 %vm167_vm0, %v525_v15 }
 0x360   :  { %v511_v9 = vsel %vm510_vm10, %v1416_v4, %v507_v8  ;;  %883 = vmatpush.msrb.mxu2 %v1763_v19 }
 0x361   :  { %v514_v16 = vmul.f32 %v511_v9, %v1830_v27 }
 0x362   :  { %884 = vmatpush.msrb.mxu2 %v1768_v20  ;;  %v1374_v20 = vld [vmem:[%s2085_s11] ss:$0 sm:$0xff] }
 0x363   :  { %v520_v21 = vmul.f32 %v1371_v57, %v514_v16  ;;  %v1375_v16 = vld [vmem:[%s2086_s12] ss:$0 sm:$0xff] }
 0x365   :  { %v526_v23 = vadd.f32 %v1372_v61, %v520_v21  ;;  %v1301_v61 = vld [vmem:[%s2076_s2 + $0x20] sm:$0xff] }
 0x366   :  { %758 = vmatpush.msra.mxu3 %v1301_v61  ;;  %v1307_v61 = vld [vmem:[%s2078_s4 + $0x28] sm:$0xff] }
 0x367   :  { %1297 = vmatmul.msk.f32.gmra.mxu1 %vm167_vm0, %v526_v23 }
 0x368   :  { %985 = vmatpush.msrb.mxu3 %v1309_v59 }
 0x36a   :  { %986 = vmatpush.msrb.mxu3 %v1308_v60 }
 0x36c   :  { %987 = vmatpush.msrb.mxu3 %v1307_v61 }
 0x3d4   :  { %v556_v25 = vpop.f32.mrf.mxu1 }
 0x3d5   :  { %v557_v26 = vadd.f32 %v1373_v24, %v556_v25 }
 0x3d7   :  { %v565_v27 = vmax.f32 %v557_v26, 0.0 }
 0x3d9   :  { %1298 = vmatmul.msk.f32.vlgmr.msra.gmra.mxu2 %vm568_vm11, %v565_v27 }
 0x3dc   :  { %v559_v28 = vpop.f32.mrf.mxu1 }
 0x3dd   :  { %v560_v29 = vadd.f32 %v1373_v24, %v559_v28 }
 0x3df   :  { %v566_v30 = vmax.f32 %v560_v29, 0.0 }
 0x3e1   :  { %1299 = vmatmul.msk.f32.gmra.mxu2 %vm568_vm11, %v566_v30 }
 0x3e4   :  { %v562_v17 = vpop.f32.mrf.mxu1 }
 0x3e5   :  { %v563_v18 = vadd.f32 %v1373_v24, %v562_v17  ;;  %v1376_v24 = vld [vmem:[#allocation10] ss:$0 sm:$0xff] }
 0x3e7   :  { %v567_v19 = vmax.f32 %v563_v18, 0.0 }
 0x3e9   :  { %1300 = vmatmul.msk.f32.gmra.mxu2 %vm568_vm11, %v567_v19 }
 0x45c   :  { %v595_v31 = vpop.f32.mrf.mxu2 }
 0x45d   :  { %v604_v32 = vadd.f32 %v595_v31, %v524_v2 }
 0x45f   :  { %v610_v33 = vadd.f32 %v1374_v20, %v604_v32 }
 0x461   :  { %v613_v34 = vsel %vm167_vm0, %v610_v33, 0.0 }
 0x462   :  { %614 = vadd.xlane.f32.xlu2 %v613_v34 }
 0x464   :  { %v598_v35 = vpop.f32.mrf.mxu2 }
 0x465   :  { %v605_v37 = vadd.f32 %v598_v35, %v525_v15 }
 0x467   :  { %v611_v36 = vadd.f32 %v1374_v20, %v605_v37 }
 0x469   :  { %v616_v38 = vsel %vm167_vm0, %v611_v36, 0.0 }
 0x46a   :  { %617 = vadd.xlane.f32.xlu0 %v616_v38 }
 0x46c   :  { %v601_v39 = vpop.f32.mrf.mxu2 }
 0x46d   :  { %v606_v40 = vadd.f32 %v601_v39, %v526_v23 }
 0x46f   :  { %v612_v41 = vadd.f32 %v1374_v20, %v606_v40  ;;  %v1377_v40 = vld [vmem:[%s2077_s3 + $0x1] ss:$0 sm:$0xff] }
 0x471   :  { %v619_v42 = vsel %vm167_vm0, %v612_v41, 0.0 }
 0x472   :  { %620 = vadd.xlane.f32.xlu1 %v619_v42 }
 0x4d5   :  { %v615_v43 = vpop.xlane.xlu2 %614 }
 0x4d6   :  { %v622_v44 = vmul.f32 %v615_v43, %v1815_v7 }
 0x4d8   :  { %v625_v45 = vsub.f32 %v610_v33, %v622_v44 }
 0x4da   :  { %v628_v46 = vmul.f32 %v625_v45, %v625_v45 }
 0x4dc   :  { %v631_v47 = vsel %vm167_vm0, %v628_v46, 0.0 }
 0x4dd   :  { %632 = vadd.xlane.f32.xlu2 %v631_v47  ;;  %v618_v48 = vpop.xlane.xlu0 %617 }
 0x4de   :  { %v623_v49 = vmul.f32 %v618_v48, %v1815_v7 }
 0x4e0   :  { %v626_v50 = vsub.f32 %v611_v36, %v623_v49 }
 0x4e2   :  { %v629_v51 = vmul.f32 %v626_v50, %v626_v50 }
 0x4e4   :  { %v634_v52 = vsel %vm167_vm0, %v629_v51, 0.0 }
 0x4e5   :  { %635 = vadd.xlane.f32.xlu0 %v634_v52  ;;  %v621_v53 = vpop.xlane.xlu1 %620 }
 0x4e6   :  { %v624_v55 = vmul.f32 %v621_v53, %v1815_v7 }
 0x4e8   :  { %v1908_v56 = vsub.f32 %v612_v41, %v624_v55 }
 0x4ea   :  { %v630_v57 = vmul.f32 %v1908_v56, %v1908_v56 }
 0x4ec   :  { %v637_v58 = vsel %vm167_vm0, %v630_v57, 0.0 }
 0x4ed   :  { %638 = vadd.xlane.f32.xlu1 %v637_v58 }
 0x550   :  { %v633_v62 = vpop.xlane.xlu2 %632 }
 0x551   :  { %v640_v63 = vmul.f32 %v633_v62, %v1815_v7 }
 0x553   :  { %v643_v0 = vadd.f32 1e-05, %v640_v63  ;;  %v1306_v63 = vld [vmem:[%s2078_s4 + $0x20] sm:$0xff] }
 0x554   :  { %988 = vmatpush.msrb.mxu3 %v1306_v63 }
 0x555   :  { %1417 = vrsqrt.f32 %v643_v0  ;;  %vm652_vm13 = vweird.f32 %v643_v0 }
 0x558   :  { %v636_v1 = vpop.xlane.xlu0 %635 }
 0x559   :  { %v641_v4 = vmul.f32 %v636_v1, %v1815_v7 }
 0x55b   :  { %v1418_v2 = vpop.eup %1417  ;;  %v644_v6 = vadd.f32 1e-05, %v641_v4 }
 0x55c   :  { %v647_v5 = vmul.f32 %v1418_v2, %v643_v0  ;;  %vm653_vm12 = vweird.f32 %v1418_v2 }
 0x55d   :  { %1419 = vrsqrt.f32 %v644_v6  ;;  %vm654_vm14 = vmor %vm652_vm13, %vm653_vm12  ;;  %vm662_vm1 = vweird.f32 %v644_v6 }
 0x55e   :  { %v648_v10 = vmul.f32 %v1418_v2, %v647_v5 }
 0x560   :  { %v649_v11 = vmul.f32 0.5, %v648_v10  ;;  %v639_v12 = vpop.xlane.xlu1 %638 }
 0x561   :  { %v642_v3 = vmul.f32 %v639_v12, %v1815_v7 }
 0x562   :  { %v650_v13 = vsub.f32 1.5, %v649_v11 }
 0x563   :  { %v1420_v14 = vpop.eup %1419  ;;  %v645_v15 = vadd.f32 1e-05, %v642_v3 }
 0x564   :  { %v651_v8 = vmul.f32 %v1418_v2, %v650_v13  ;;  %v657_v9 = vmul.f32 %v1420_v14, %v644_v6  ;;  %vm663_vm15 = vweird.f32 %v1420_v14 }
 0x565   :  { %1421 = vrsqrt.f32 %v645_v15  ;;  %vm664_vm2 = vmor %vm662_vm1, %vm663_vm15  ;;  %vm672_vm4 = vweird.f32 %v645_v15 }
 0x566   :  { %v655_v21 = vsel %vm654_vm14, %v1418_v2, %v651_v8  ;;  %v658_v23 = vmul.f32 %v1420_v14, %v657_v9 }
 0x567   :  { %v676_v22 = vmul.f32 %v655_v21, %v625_v45 }
 0x568   :  { %v659_v25 = vmul.f32 0.5, %v658_v23 }
 0x569   :  { %v682_v26 = vmul.f32 %v1375_v16, %v676_v22 }
 0x56a   :  { %v660_v27 = vsub.f32 1.5, %v659_v25 }
 0x56b   :  { %v1422_v28 = vpop.eup %1421  ;;  %v1931_v29 = vadd.f32 %v1376_v24, %v682_v26 }
 0x56c   :  { %v661_v30 = vmul.f32 %v1420_v14, %v660_v27  ;;  %v667_v17 = vmul.f32 %v1422_v28, %v645_v15  ;;  %vm673_vm3 = vweird.f32 %v1422_v28 }
 0x56d   :  { %1326 = vmatmul.msk.f32.vlgmr.msra.gmra.mxu3 %vm167_vm0, %v1931_v29  ;;  %vm674_vm5 = vmor %vm672_vm4, %vm673_vm3 }
 0x56e   :  { %v665_v18 = vsel %vm664_vm2, %v1420_v14, %v661_v30  ;;  %v668_v19 = vmul.f32 %v1422_v28, %v667_v17 }
 0x56f   :  { %v677_v20 = vmul.f32 %v665_v18, %v626_v50 }
 0x570   :  { %v669_v31 = vmul.f32 0.5, %v668_v19 }
 0x571   :  { %v683_v32 = vmul.f32 %v1375_v16, %v677_v20 }
 0x572   :  { %v670_v33 = vsub.f32 1.5, %v669_v31 }
 0x573   :  { %v1935_v34 = vadd.f32 %v1376_v24, %v683_v32 }
 0x574   :  { %v671_v35 = vmul.f32 %v1422_v28, %v670_v33 }
 0x575   :  { %1327 = vmatmul.msk.f32.gmra.mxu3 %vm167_vm0, %v1935_v34 }
 0x576   :  { %v675_v37 = vsel %vm674_vm5, %v1422_v28, %v671_v35 }
 0x577   :  { %v678_v36 = vmul.f32 %v675_v37, %v1908_v56 }
 0x579   :  { %v684_v38 = vmul.f32 %v1375_v16, %v678_v36 }
 0x57b   :  { %v1940_v39 = vadd.f32 %v1376_v24, %v684_v38 }
 0x57d   :  { %1328 = vmatmul.msk.f32.gmra.mxu3 %vm167_vm0, %v1940_v39 }
 0x5f0   :  { %v760_v41 = vpop.f32.mrf.mxu3 }
 0x5f1   :  { %v761_v42 = vadd.f32 %v1377_v40, %v760_v41 }
 0x5f3   :  { %772 = vrot.lane.b32.xlu0 %v761_v42, %s1620_s30 }
 0x5f8   :  { %v763_v43 = vpop.f32.mrf.mxu3 }
 0x5f9   :  { %v764_v44 = vadd.f32 %v1377_v40, %v763_v43 }
 0x5fb   :  { %934 = vrot.lane.b32.xlu0 %v761_v42, %s1621_s15  ;;  %774 = vrot.lane.b32.xlu2 %v764_v44, %s1620_s30 }
 0x600   :  { %v766_v45 = vpop.f32.mrf.mxu3 }
 0x601   :  { %v767_v46 = vadd.f32 %v1377_v40, %v766_v45 }
 0x603   :  { %938 = vrot.lane.b32.xlu2 %v767_v46, %s1621_s15  ;;  %776 = vrot.lane.b32.xlu1 %v767_v46, %s1620_s30 }
 0x60b   :  { %936 = vrot.lane.b32.xlu1 %v764_v44, %s1621_s15 }
 0x655   :  { %v775_v47 = vpop.permute.xlu2 %774 }
 0x656   :  { %v857_v48 = vmul.f32 %v775_v47, %v761_v42  ;;  %v782_v51 = vmul.f32 %v775_v47, %v764_v44  ;;  %v821_v54 = vmul.f32 %v775_v47, %v767_v46 }
 0x658   :  { %1335 = vmatmul.msk.f32.vlgmr.msrb.gmra.mxu2 %vm167_vm0, %v857_v48 }
 0x65d   :  { %v939_v17 = vpop.permute.xlu2 %938 }
 0x665   :  { %v773_v49 = vpop.permute.xlu0 %772 }
 0x666   :  { %v781_v50 = vmul.f32 %v773_v49, %v761_v42  ;;  %v820_v57 = vmul.f32 %v773_v49, %v764_v44  ;;  %v859_v58 = vmul.f32 %v773_v49, %v767_v46 }
 0x668   :  { %1329 = vmatmul.msk.f32.vlgmr.msra.gmra.mxu0 %vm167_vm0, %v781_v50 }
 0x66d   :  { %v935_v18 = vpop.permute.xlu0 %934 }
 0x670   :  { %1330 = vmatmul.msk.f32.gmra.mxu0 %vm167_vm0, %v782_v51 }
 0x675   :  { %v777_v52 = vpop.permute.xlu1 %776 }
 0x676   :  { %v783_v53 = vmul.f32 %v777_v52, %v767_v46  ;;  %v819_v55 = vmul.f32 %v777_v52, %v761_v42  ;;  %v858_v56 = vmul.f32 %v777_v52, %v764_v44 }
 0x678   :  { %1331 = vmatmul.msk.f32.gmra.mxu0 %vm167_vm0, %v783_v53  ;;  %1332 = vmatmul.msk.f32.vlgmr.msra.gmra.mxu1 %vm167_vm0, %v819_v55 }
 0x679   :  { %1336 = vmatmul.msk.f32.gmra.mxu2 %vm167_vm0, %v858_v56 }
 0x67d   :  { %v937_v44 = vpop.permute.xlu1 %936 }
 0x680   :  { %1333 = vmatmul.msk.f32.gmra.mxu1 %vm167_vm0, %v820_v57 }
 0x681   :  { %1337 = vmatmul.msk.f32.gmra.mxu2 %vm167_vm0, %v859_v58 }
 0x688   :  { %1334 = vmatmul.msk.f32.gmra.mxu1 %vm167_vm0, %v821_v54 }
 0x6db   :  { %v886_v0 = vpop.f32.mrf.mxu2 }
 0x6e5   :  { %v810_v62 = vpop.f32.mrf.mxu0 }
 0x6ed   :  { %v813_v11 = vpop.f32.mrf.mxu0 }
 0x6f5   :  { %v848_v1 = vpop.f32.mrf.mxu1  ;;  %v816_v27 = vpop.f32.mrf.mxu0 }
 0x6f6   :  { %v895_v4 = vmax.f32 %v810_v62, %v848_v1 }
 0x6f8   :  { %v898_v2 = vmax.f32 %v895_v4, %v886_v0 }
 0x6fa   :  { %v901_v6 = vsub.f32 %v810_v62, %v898_v2  ;;  %v910_v5 = vsub.f32 %v848_v1, %v898_v2  ;;  %v919_v10 = vsub.f32 %v886_v0, %v898_v2 }
 0x6fc   :  { %v904_v12 = vmul.f32 1.442695, %v901_v6  ;;  %v913_v3 = vmul.f32 1.442695, %v910_v5  ;;  %v922_v13 = vmul.f32 1.442695, %v919_v10  ;;  %v889_v14 = vpop.f32.mrf.mxu2 }
 0x6fd   :  { %v851_v15 = vpop.f32.mrf.mxu1 }
 0x6fe   :  { %1423 = vpow2.f32 %v904_v12  ;;  %v896_v8 = vmax.f32 %v813_v11, %v851_v15 }
 0x6ff   :  { %1425 = vpow2.f32 %v913_v3 }
 0x700   :  { %v899_v9 = vmax.f32 %v896_v8, %v889_v14  ;;  %1427 = vpow2.f32 %v922_v13 }
 0x702   :  { %v902_v16 = vsub.f32 %v813_v11, %v899_v9  ;;  %v911_v21 = vsub.f32 %v851_v15, %v899_v9  ;;  %v920_v23 = vsub.f32 %v889_v14, %v899_v9  ;;  %v1378_v14 = vld [vmem:[#allocation7 + $0x1] ss:$0 sm:$0xff] }
 0x704   :  { %v1424_v22 = vpop.eup %1423  ;;  %v906_v24 = vmul.f32 1.442695, %v902_v16  ;;  %v915_v25 = vmul.f32 1.442695, %v911_v21  ;;  %v924_v28 = vmul.f32 1.442695, %v920_v23  ;;  %v892_v35 = vpop.f32.mrf.mxu2 }
 0x705   :  { %v1426_v26 = vpop.eup %1425  ;;  %v854_v30 = vpop.f32.mrf.mxu1  ;;  %v943_v32 = vmul.f32 %v1424_v22, %v935_v18 }
 0x706   :  { %v928_v19 = vadd.f32 %v1426_v26, %v1424_v22  ;;  %1429 = vpow2.f32 %v906_v24  ;;  %v897_v20 = vmax.f32 %v816_v27, %v854_v30  ;;  %v1428_v31 = vpop.eup %1427  ;;  %v946_v33 = vmul.f32 %v1426_v26, %v939_v17 }
 0x707   :  { %1431 = vpow2.f32 %v915_v25  ;;  %v952_v48 = vmul.f32 %v1428_v31, %v937_v44 }
 0x708   :  { %v931_v37 = vadd.f32 %v1428_v31, %v928_v19  ;;  %v900_v36 = vmax.f32 %v897_v20, %v892_v35  ;;  %1433 = vpow2.f32 %v924_v28  ;;  %v949_v41 = vadd.f32 %v946_v33, %v943_v32 }
 0x70a   :  { %1435 = vrcp.f32 %v931_v37  ;;  %v903_v38 = vsub.f32 %v816_v27, %v900_v36  ;;  %v912_v40 = vsub.f32 %v854_v30, %v900_v36  ;;  %v921_v42 = vsub.f32 %v892_v35, %v900_v36 }
 0x70b   :  { %v955_v52 = vadd.f32 %v952_v48, %v949_v41  ;;  %v1313_v41 = vld [vmem:[%s2082_s8 + $0x30] sm:$0xff] }
 0x70c   :  { %v1430_v43 = vpop.eup %1429  ;;  %v908_v45 = vmul.f32 1.442695, %v903_v38  ;;  %v917_v46 = vmul.f32 1.442695, %v912_v40  ;;  %v926_v49 = vmul.f32 1.442695, %v921_v42 }
 0x70d   :  { %v1432_v47 = vpop.eup %1431  ;;  %v944_v55 = vmul.f32 %v1430_v43, %v937_v44  ;;  %v1314_v40 = vld [vmem:[%s2082_s8 + $0x38] sm:$0xff]  ;;  %v1312_v42 = vld [vmem:[%s2082_s8 + $0x28] sm:$0xff] }
 0x70e   :  { %v929_v50 = vadd.f32 %v1432_v47, %v1430_v43  ;;  %1437 = vpow2.f32 %v908_v45  ;;  %v1434_v51 = vpop.eup %1433  ;;  %v947_v53 = vmul.f32 %v1432_v47, %v935_v18  ;;  %1110 = vmatpush.msrb.mxu0 %v1314_v40  ;;  %v1311_v43 = vld [vmem:[%s2082_s8 + $0x20] sm:$0xff] }
 0x70f   :  { %1439 = vpow2.f32 %v917_v46  ;;  %v953_v61 = vmul.f32 %v1434_v51, %v939_v17  ;;  %v1382_v40 = vld [vmem:[%s2085_s11 + $0x1] ss:$0 sm:$0xff] }
 0x710   :  { %v1436_v56 = vpop.eup %1435  ;;  %v932_v57 = vadd.f32 %v1434_v51, %v929_v50  ;;  %1441 = vpow2.f32 %v926_v49  ;;  %v950_v54 = vadd.f32 %v947_v53, %v944_v55  ;;  %1111 = vmatpush.msrb.mxu0 %v1313_v41  ;;  %v1322_v53 = vld [vmem:[%s2084_s10 + $0x70] sm:$0xff] }
 0x711   :  { %v961_v58 = vmul.f32 %v1436_v56, %v955_v52  ;;  %v1323_v52 = vld [vmem:[%s2084_s10 + $0x78] sm:$0xff]  ;;  %v1321_v56 = vld [vmem:[%s2084_s10 + $0x68] sm:$0xff] }
 0x712   :  { %1443 = vrcp.f32 %v932_v57  ;;  %v956_v1 = vadd.f32 %v953_v61, %v950_v54  ;;  %1112 = vmatpush.msrb.mxu0 %v1312_v42  ;;  %1144 = vmatpush.msrb.mxu1 %v1323_v52 }
 0x713   :  { %1338 = vmatmul.msk.f32.vlgmr.msrb.gmra.mxu3 %vm167_vm0, %v961_v58 }
 0x714   :  { %v1438_v59 = vpop.eup %1437  ;;  %1113 = vmatpush.msrb.mxu0 %v1311_v43  ;;  %1145 = vmatpush.msrb.mxu1 %v1322_v53 }
 0x715   :  { %v1440_v60 = vpop.eup %1439  ;;  %v945_v4 = vmul.f32 %v1438_v59, %v939_v17 }
 0x716   :  { %v930_v62 = vadd.f32 %v1440_v60, %v1438_v59  ;;  %v1442_v63 = vpop.eup %1441  ;;  %v948_v0 = vmul.f32 %v1440_v60, %v937_v44  ;;  %v1320_v59 = vld [vmem:[%s2084_s10 + $0x60] sm:$0xff]  ;;  %1146 = vmatpush.msrb.mxu1 %v1321_v56 }
 0x717   :  { %v954_v11 = vmul.f32 %v1442_v63, %v935_v18 }
 0x718   :  { %v1444_v2 = vpop.eup %1443  ;;  %v933_v6 = vadd.f32 %v1442_v63, %v930_v62  ;;  %v951_v10 = vadd.f32 %v948_v0, %v945_v4  ;;  %v1319_v63 = vld [vmem:[%s2084_s10 + $0x58] sm:$0xff]  ;;  %1147 = vmatpush.msrb.mxu1 %v1320_v59  ;;  %v1379_v4 = vld [vmem:[%s2080_s6 + $0x1] ss:$0 sm:$0xff] }
 0x719   :  { %v962_v5 = vmul.f32 %v1444_v2, %v956_v1  ;;  %v1318_v2 = vld [vmem:[%s2084_s10 + $0x50] sm:$0xff] }
 0x71a   :  { %1445 = vrcp.f32 %v933_v6  ;;  %v957_v12 = vadd.f32 %v954_v11, %v951_v10  ;;  %1148 = vmatpush.msrb.mxu1 %v1319_v63  ;;  %v1380_v11 = vld [vmem:[#allocation8 + $0x1] ss:$0 sm:$0xff] }
 0x71b   :  { %1339 = vmatmul.msk.f32.gmra.mxu3 %vm167_vm0, %v962_v5 }
 0x71c   :  { %1149 = vmatpush.msrb.mxu1 %v1318_v2 }
 0x720   :  { %v1446_v3 = vpop.eup %1445 }
 0x721   :  { %v963_v13 = vmul.f32 %v1446_v3, %v957_v12  ;;  %v1317_v12 = vld [vmem:[%s2084_s10 + $0x48] sm:$0xff] }
 0x722   :  { %1150 = vmatpush.msrb.mxu1 %v1317_v12 }
 0x723   :  { %1340 = vmatmul.msk.f32.gmra.mxu3 %vm167_vm0, %v963_v13 }
 0x796   :  { %v990_v15 = vpop.f32.mrf.mxu3 }
 0x797   :  { %v999_v8 = vadd.f32 %v990_v15, %v1931_v29 }
 0x799   :  { %v1005_v9 = vadd.f32 %v1378_v14, %v999_v8 }
 0x79b   :  { %v1008_v16 = vsel %vm167_vm0, %v1005_v9, 0.0 }
 0x79c   :  { %1009 = vadd.xlane.f32.xlu0 %v1008_v16 }
 0x79e   :  { %v993_v21 = vpop.f32.mrf.mxu3 }
 0x79f   :  { %v1000_v23 = vadd.f32 %v993_v21, %v1935_v34 }
 0x7a1   :  { %v1006_v22 = vadd.f32 %v1378_v14, %v1000_v23 }
 0x7a3   :  { %v1011_v24 = vsel %vm167_vm0, %v1006_v22, 0.0 }
 0x7a4   :  { %1012 = vadd.xlane.f32.xlu2 %v1011_v24 }
 0x7a6   :  { %v996_v25 = vpop.f32.mrf.mxu3 }
 0x7a7   :  { %v1001_v26 = vadd.f32 %v996_v25, %v1940_v39 }
 0x7a9   :  { %v1007_v27 = vadd.f32 %v1378_v14, %v1001_v26 }
 0x7ab   :  { %v1014_v28 = vsel %vm167_vm0, %v1007_v27, 0.0 }
 0x7ac   :  { %1015 = vadd.xlane.f32.xlu1 %v1014_v28 }
 0x80f   :  { %v1010_v30 = vpop.xlane.xlu0 %1009 }
 0x810   :  { %v1017_v29 = vmul.f32 %v1010_v30, %v1815_v7 }
 0x812   :  { %v1020_v17 = vsub.f32 %v1005_v9, %v1017_v29 }
 0x814   :  { %v1023_v18 = vmul.f32 %v1020_v17, %v1020_v17 }
 0x816   :  { %v1026_v19 = vsel %vm167_vm0, %v1023_v18, 0.0 }
 0x817   :  { %1027 = vadd.xlane.f32.xlu0 %v1026_v19  ;;  %v1013_v34 = vpop.xlane.xlu2 %1012  ;;  %v1316_v19 = vld [vmem:[%s2084_s10 + $0x40] sm:$0xff] }
 0x818   :  { %v1018_v20 = vmul.f32 %v1013_v34, %v1815_v7  ;;  %1151 = vmatpush.msrb.mxu1 %v1316_v19  ;;  %v1381_v34 = vld [vmem:[%s2083_s9 + $0x1] ss:$0 sm:$0xff] }
 0x81a   :  { %v1986_v31 = vsub.f32 %v1006_v22, %v1018_v20 }
 0x81c   :  { %v1024_v39 = vmul.f32 %v1986_v31, %v1986_v31 }
 0x81e   :  { %v1029_v32 = vsel %vm167_vm0, %v1024_v39, 0.0 }
 0x81f   :  { %1030 = vadd.xlane.f32.xlu2 %v1029_v32  ;;  %v1016_v33 = vpop.xlane.xlu1 %1015 }
 0x820   :  { %v1019_v35 = vmul.f32 %v1016_v33, %v1815_v7 }
 0x822   :  { %v1992_v37 = vsub.f32 %v1007_v27, %v1019_v35 }
 0x824   :  { %v1025_v36 = vmul.f32 %v1992_v37, %v1992_v37 }
 0x826   :  { %v1032_v38 = vsel %vm167_vm0, %v1025_v36, 0.0 }
 0x827   :  { %1033 = vadd.xlane.f32.xlu1 %v1032_v38 }
 0x88a   :  { %v1028_v44 = vpop.xlane.xlu0 %1027 }
 0x88b   :  { %v1035_v45 = vmul.f32 %v1028_v44, %v1815_v7 }
 0x88d   :  { %v1038_v46 = vadd.f32 1e-05, %v1035_v45 }
 0x88f   :  { %1447 = vrsqrt.f32 %v1038_v46  ;;  %vm1047_vm7 = vweird.f32 %v1038_v46 }
 0x892   :  { %v1031_v47 = vpop.xlane.xlu2 %1030 }
 0x893   :  { %v1036_v48 = vmul.f32 %v1031_v47, %v1815_v7 }
 0x895   :  { %v1448_v49 = vpop.eup %1447  ;;  %v1039_v50 = vadd.f32 1e-05, %v1036_v48 }
 0x896   :  { %v1042_v51 = vmul.f32 %v1448_v49, %v1038_v46  ;;  %vm1048_vm6 = vweird.f32 %v1448_v49 }
 0x897   :  { %1449 = vrsqrt.f32 %v1039_v50  ;;  %vm1049_vm8 = vmor %vm1047_vm7, %vm1048_vm6  ;;  %vm1057_vm10 = vweird.f32 %v1039_v50 }
 0x898   :  { %v1043_v55 = vmul.f32 %v1448_v49, %v1042_v51 }
 0x89a   :  { %v1044_v57 = vmul.f32 0.5, %v1043_v55  ;;  %v1034_v58 = vpop.xlane.xlu1 %1033 }
 0x89b   :  { %v1037_v54 = vmul.f32 %v1034_v58, %v1815_v7 }
 0x89c   :  { %v1045_v60 = vsub.f32 1.5, %v1044_v57 }
 0x89d   :  { %v1450_v61 = vpop.eup %1449  ;;  %v1040_v62 = vadd.f32 1e-05, %v1037_v54 }
 0x89e   :  { %v1046_v0 = vmul.f32 %v1448_v49, %v1045_v60  ;;  %v1052_v1 = vmul.f32 %v1450_v61, %v1039_v50  ;;  %vm1058_vm9 = vweird.f32 %v1450_v61 }
 0x89f   :  { %1451 = vrsqrt.f32 %v1040_v62  ;;  %vm1059_vm12 = vmor %vm1057_vm10, %vm1058_vm9  ;;  %vm1067_vm14 = vweird.f32 %v1040_v62  ;;  %vm1259_vm10 = vcmask 785408  }
 0x8a0   :  { %v1050_v6 = vsel %vm1049_vm8, %v1448_v49, %v1046_v0  ;;  %v1053_v5 = vmul.f32 %v1450_v61, %v1052_v1 }
 0x8a1   :  { %v1071_v10 = vmul.f32 %v1050_v6, %v1020_v17 }
 0x8a2   :  { %v1054_v3 = vmul.f32 0.5, %v1053_v5 }
 0x8a3   :  { %v1077_v13 = vmul.f32 %v1379_v4, %v1071_v10 }
 0x8a4   :  { %v1055_v14 = vsub.f32 1.5, %v1054_v3 }
 0x8a5   :  { %v1452_v15 = vpop.eup %1451  ;;  %v1083_v8 = vadd.f32 %v1380_v11, %v1077_v13 }
 0x8a6   :  { %v1056_v9 = vmul.f32 %v1450_v61, %v1055_v14  ;;  %v1062_v16 = vmul.f32 %v1452_v15, %v1040_v62  ;;  %vm1068_vm13 = vweird.f32 %v1452_v15 }
 0x8a7   :  { %1341 = vmatmul.msk.f32.vlgmr.msrb.gmra.mxu0 %vm167_vm0, %v1083_v8  ;;  %vm1069_vm15 = vmor %vm1067_vm14, %vm1068_vm13 }
 0x8a8   :  { %v1060_v21 = vsel %vm1059_vm12, %v1450_v61, %v1056_v9  ;;  %v1063_v23 = vmul.f32 %v1452_v15, %v1062_v16 }
 0x8a9   :  { %v1072_v22 = vmul.f32 %v1060_v21, %v1986_v31 }
 0x8aa   :  { %v1064_v24 = vmul.f32 0.5, %v1063_v23 }
 0x8ab   :  { %v1078_v25 = vmul.f32 %v1379_v4, %v1072_v22 }
 0x8ac   :  { %v1065_v26 = vsub.f32 1.5, %v1064_v24 }
 0x8ad   :  { %v1084_v27 = vadd.f32 %v1380_v11, %v1078_v25 }
 0x8ae   :  { %v1066_v28 = vmul.f32 %v1452_v15, %v1065_v26  ;;  %v1383_v26 = vld [vmem:[%s2086_s12 + $0x1] ss:$0 sm:$0xff]  ;;  %s1623_s12 = smov 32  }
 0x8af   :  { %1342 = vmatmul.msk.f32.gmra.mxu0 %vm167_vm0, %v1084_v27 }
 0x8b0   :  { %v1070_v30 = vsel %vm1069_vm15, %v1452_v15, %v1066_v28 }
 0x8b1   :  { %v1073_v29 = vmul.f32 %v1070_v30, %v1992_v37 }
 0x8b3   :  { %v1079_v17 = vmul.f32 %v1379_v4, %v1073_v29  ;;  %v1384_v29 = vld [vmem:[#allocation10 + $0x1] ss:$0 sm:$0xff] }
 0x8b5   :  { %v1085_v18 = vadd.f32 %v1380_v11, %v1079_v17 }
 0x8b7   :  { %1343 = vmatmul.msk.f32.gmra.mxu0 %vm167_vm0, %v1085_v18 }
 0x924   :  { %v1115_v20 = vpop.f32.mrf.mxu0 }
 0x925   :  { %v1116_v31 = vadd.f32 %v1381_v34, %v1115_v20 }
 0x927   :  { %v1124_v39 = vmax.f32 %v1116_v31, 0.0 }
 0x929   :  { %1344 = vmatmul.msk.f32.vlgmr.msrb.gmra.mxu1 %vm568_vm11, %v1124_v39 }
 0x92c   :  { %v1118_v32 = vpop.f32.mrf.mxu0 }
 0x92d   :  { %v1119_v33 = vadd.f32 %v1381_v34, %v1118_v32 }
 0x92f   :  { %v1125_v35 = vmax.f32 %v1119_v33, 0.0 }
 0x931   :  { %1345 = vmatmul.msk.f32.gmra.mxu1 %vm568_vm11, %v1125_v35 }
 0x934   :  { %v1121_v37 = vpop.f32.mrf.mxu0 }
 0x935   :  { %v1122_v36 = vadd.f32 %v1381_v34, %v1121_v37 }
 0x937   :  { %v1126_v38 = vmax.f32 %v1122_v36, 0.0 }
 0x939   :  { %1346 = vmatmul.msk.f32.gmra.mxu1 %vm568_vm11, %v1126_v38 }
 0x9a6   :  { %v1153_v41 = vpop.f32.mrf.mxu1 }
 0x9a7   :  { %v1162_v42 = vadd.f32 %v1153_v41, %v1083_v8 }
 0x9a9   :  { %v1168_v43 = vadd.f32 %v1382_v40, %v1162_v42 }
 0x9ab   :  { %v1171_v44 = vsel %vm167_vm0, %v1168_v43, 0.0 }
 0x9ac   :  { %1172 = vadd.xlane.f32.xlu1 %v1171_v44 }
 0x9ae   :  { %v1156_v45 = vpop.f32.mrf.mxu1 }
 0x9af   :  { %v1163_v46 = vadd.f32 %v1156_v45, %v1084_v27 }
 0x9b1   :  { %v1169_v47 = vadd.f32 %v1382_v40, %v1163_v46 }
 0x9b3   :  { %v1174_v48 = vsel %vm167_vm0, %v1169_v47, 0.0 }
 0x9b4   :  { %1175 = vadd.xlane.f32.xlu0 %v1174_v48 }
 0x9b6   :  { %v1159_v49 = vpop.f32.mrf.mxu1 }
 0x9b7   :  { %v1164_v50 = vadd.f32 %v1159_v49, %v1085_v18 }
 0x9b9   :  { %v1170_v51 = vadd.f32 %v1382_v40, %v1164_v50 }
 0x9bb   :  { %v1177_v52 = vsel %vm167_vm0, %v1170_v51, 0.0 }
 0x9bc   :  { %1178 = vadd.xlane.f32.xlu2 %v1177_v52 }
 0xa1f   :  { %v1173_v53 = vpop.xlane.xlu1 %1172 }
 0xa20   :  { %v1180_v55 = vmul.f32 %v1173_v53, %v1815_v7 }
 0xa22   :  { %v1183_v56 = vsub.f32 %v1168_v43, %v1180_v55 }
 0xa24   :  { %v1186_v57 = vmul.f32 %v1183_v56, %v1183_v56 }
 0xa26   :  { %v1189_v58 = vsel %vm167_vm0, %v1186_v57, 0.0 }
 0xa27   :  { %v1176_v54 = vpop.xlane.xlu0 %1175  ;;  %1190 = vadd.xlane.f32.xlu1 %v1189_v58 }
 0xa28   :  { %v1181_v59 = vmul.f32 %v1176_v54, %v1815_v7 }
 0xa2a   :  { %v1184_v60 = vsub.f32 %v1169_v47, %v1181_v59 }
 0xa2c   :  { %v1187_v61 = vmul.f32 %v1184_v60, %v1184_v60 }
 0xa2e   :  { %v1192_v62 = vsel %vm167_vm0, %v1187_v61, 0.0 }
 0xa2f   :  { %1193 = vadd.xlane.f32.xlu0 %v1192_v62  ;;  %v1179_v63 = vpop.xlane.xlu2 %1178 }
 0xa30   :  { %v1182_v0 = vmul.f32 %v1179_v63, %v1815_v7 }
 0xa32   :  { %v1185_v1 = vsub.f32 %v1170_v51, %v1182_v0 }
 0xa34   :  { %v1188_v4 = vmul.f32 %v1185_v1, %v1185_v1 }
 0xa36   :  { %v1195_v2 = vsel %vm167_vm0, %v1188_v4, 0.0 }
 0xa37   :  { %1196 = vadd.xlane.f32.xlu2 %v1195_v2 }
 0xa9a   :  { %v1191_v6 = vpop.xlane.xlu1 %1190 }
 0xa9b   :  { %v1198_v5 = vmul.f32 %v1191_v6, %v1815_v7 }
 0xa9d   :  { %v1201_v10 = vadd.f32 1e-05, %v1198_v5 }
 0xa9f   :  { %1453 = vrsqrt.f32 %v1201_v10  ;;  %vm1210_vm2 = vweird.f32 %v1201_v10 }
 0xaa2   :  { %v1194_v11 = vpop.xlane.xlu0 %1193 }
 0xaa3   :  { %v1199_v12 = vmul.f32 %v1194_v11, %v1815_v7 }
 0xaa5   :  { %v1454_v3 = vpop.eup %1453  ;;  %v1202_v13 = vadd.f32 1e-05, %v1199_v12 }
 0xaa6   :  { %v1205_v14 = vmul.f32 %v1454_v3, %v1201_v10  ;;  %vm1211_vm1 = vweird.f32 %v1454_v3 }
 0xaa7   :  { %1455 = vrsqrt.f32 %v1202_v13  ;;  %vm1212_vm3 = vmor %vm1210_vm2, %vm1211_vm1  ;;  %vm1220_vm5 = vweird.f32 %v1202_v13 }
 0xaa8   :  { %v1206_v15 = vmul.f32 %v1454_v3, %v1205_v14 }
 0xaaa   :  { %v1207_v8 = vmul.f32 0.5, %v1206_v15  ;;  %v1197_v9 = vpop.xlane.xlu2 %1196 }
 0xaab   :  { %v1200_v16 = vmul.f32 %v1197_v9, %v1815_v7 }
 0xaac   :  { %v1208_v21 = vsub.f32 1.5, %v1207_v8 }
 0xaad   :  { %v1456_v23 = vpop.eup %1455  ;;  %v1203_v22 = vadd.f32 1e-05, %v1200_v16 }
 0xaae   :  { %v1209_v24 = vmul.f32 %v1454_v3, %v1208_v21  ;;  %v1215_v25 = vmul.f32 %v1456_v23, %v1202_v13  ;;  %vm1221_vm4 = vweird.f32 %v1456_v23 }
 0xaaf   :  { %1457 = vrsqrt.f32 %v1203_v22  ;;  %vm1222_vm6 = vmor %vm1220_vm5, %vm1221_vm4  ;;  %vm1230_vm8 = vweird.f32 %v1203_v22 }
 0xab0   :  { %v1213_v27 = vsel %vm1212_vm3, %v1454_v3, %v1209_v24  ;;  %v1216_v28 = vmul.f32 %v1456_v23, %v1215_v25 }
 0xab1   :  { %v1234_v30 = vmul.f32 %v1213_v27, %v1183_v56 }
 0xab2   :  { %v1217_v17 = vmul.f32 0.5, %v1216_v28 }
 0xab3   :  { %v1240_v18 = vmul.f32 %v1383_v26, %v1234_v30 }
 0xab4   :  { %v1218_v7 = vsub.f32 1.5, %v1217_v17 }
 0xab5   :  { %v1458_v19 = vpop.eup %1457  ;;  %v1246_v34 = vadd.f32 %v1384_v29, %v1240_v18 }
 0xab6   :  { %v1219_v20 = vmul.f32 %v1456_v23, %v1218_v7  ;;  %v1225_v31 = vmul.f32 %v1458_v19, %v1203_v22  ;;  %vm1231_vm7 = vweird.f32 %v1458_v19 }
 0xab7   :  { %vm1232_vm9 = vmor %vm1230_vm8, %vm1231_vm7 }
 0xab8   :  { %v1223_v39 = vsel %vm1222_vm6, %v1456_v23, %v1219_v20  ;;  %v1226_v32 = vmul.f32 %v1458_v19, %v1225_v31 }
 0xab9   :  { %v1235_v33 = vmul.f32 %v1223_v39, %v1184_v60 }
 0xaba   :  { %v1227_v35 = vmul.f32 0.5, %v1226_v32 }
 0xabb   :  { %v1241_v37 = vmul.f32 %v1383_v26, %v1235_v33 }
 0xabc   :  { %v1228_v36 = vsub.f32 1.5, %v1227_v35 }
 0xabd   :  { %v1247_v38 = vadd.f32 %v1384_v29, %v1241_v37 }
 0xabe   :  { %v1229_v40 = vmul.f32 %v1458_v19, %v1228_v36 }
 0xabf   :  { %1250 = vrot.lane.b32.xlu0 %v1247_v38, %s1623_s12 }
 0xac0   :  { %v1233_v41 = vsel %vm1232_vm9, %v1458_v19, %v1229_v40 }
 0xac1   :  { %v1236_v42 = vmul.f32 %v1233_v41, %v1185_v1 }
 0xac3   :  { %v1242_v43 = vmul.f32 %v1383_v26, %v1236_v42 }
 0xac5   :  { %v1248_v44 = vadd.f32 %v1384_v29, %v1242_v43 }
 0xac7   :  { %1254 = vrot.lane.b32.xlu2 %v1248_v44, %s1621_s15 }
 0xb21   :  { %v1255_v46 = vpop.permute.xlu2 %1254 }
 0xb31   :  { %v1251_v45 = vpop.permute.xlu0 %1250 }
 0xb32   :  { %v1257_v47 = vsel %vm167_vm0, %v1246_v34, %v1251_v45 }
 0xb33   :  { %v1258_v48 = vsel %vm568_vm11, %v1257_v47, %v1255_v46 }
 0xb34   :  { %1260 = vst.msk [vmem:[#allocation11] sm:$0xff] %vm1259_vm10, %v1258_v48 }
 0xb35   :  { %1271 = dma.vmem_to_hbm [thread:$0]  %s1267_s7, 128, %s1269_s23, [#allocation4]  }
 0xb36   :  { %1609 = dma.done.wait [#allocation4], 128  }
 0xb37   :  { %1610 = vsyncadd [#allocation4], 4294967168 }
 0xb38   :  { %1276 = vsyncpa [#allocation3], 1 }
 0xb39   :  { %1277 = vsyncpa [#allocation6], 1 }
 0xb3a   :  { %1278 = vsyncpa [#allocation9], 1 }
 0xb3b   :  { %1279 = vsyncpa [#allocation4], 1 }

</bundles_post_ra>
